<compile_context>
chip_gen: v7x
topology: tpu7x:2x2x1
jax: 0.10.0
libtpu: 0.0.40
codegen_flags: <defaults>
</compile_context>

<pallas_src>
import numpy as np
import jax
import jax.numpy as jnp
from jax.experimental import pallas as pl
from jax.experimental.pallas import tpu as pltpu

_BF16 = jnp.bfloat16


# ----------------------------------------------------------------------------
# helpers
# ----------------------------------------------------------------------------
def _pick_tile(dim, cap, align):
    """Largest tile <= cap that is a multiple of `align` and divides `dim`.
    If dim <= cap, use the full dim (no padding ever needed)."""
    if dim <= cap:
        return dim
    t = cap - (cap % align)
    while t >= align:
        if dim % t == 0:
            return t
        t -= align
    return dim  # fallback: full extent (not hit for this network's shapes)


def _bn_scale_bias(bn, c, eps=1e-5):
    if bn is None:
        return jnp.ones((1, c), jnp.float32), jnp.zeros((1, c), jnp.float32)
    g, b, m, v = bn
    s = (g / jnp.sqrt(v + eps)).astype(jnp.float32)
    t = (b - m * s).astype(jnp.float32)
    return s.reshape(1, c), t.reshape(1, c)


# ----------------------------------------------------------------------------
# Kernel 1: tiled MXU matmul with fused input-BN/ReLU prologue and fused
# scale/bias/ReLU/residual epilogue (1x1 convs, im2col convs, FC)
# ----------------------------------------------------------------------------
def _make_mm_kernel(kt, relu, has_res, has_in):
    def body(*refs):
        i = 2
        a_ref, b_ref = refs[0], refs[1]
        si_ref = bi_ref = None
        if has_in:
            si_ref, bi_ref = refs[2], refs[3]
            i = 4
        so_ref, bo_ref = refs[i], refs[i + 1]
        i += 2
        r_ref = None
        if has_res:
            r_ref = refs[i]
            i += 1
        o_ref = refs[i]
        acc_ref = refs[i + 1] if kt > 1 else None

        a = a_ref[...]
        if has_in:  # bn1 + ReLU fused on the A operand (f32 math, bf16 to MXU)
            a = jnp.maximum(a.astype(jnp.float32) * si_ref[...] + bi_ref[...],
                            0.0).astype(_BF16)
        part = jnp.dot(a, b_ref[...], preferred_element_type=jnp.float32)

        def epilogue(acc):
            y = acc * so_ref[...] + bo_ref[...]
            if relu:
                y = jnp.maximum(y, 0.0)
            if has_res:
                y = y + r_ref[...].astype(jnp.float32)
            o_ref[...] = y.astype(o_ref.dtype)

        if kt == 1:
            epilogue(part)
        else:
            @pl.when(pl.program_id(2) == 0)
            def _zero():
                acc_ref[...] = jnp.zeros_like(acc_ref)

            acc_ref[...] += part

            @pl.when(pl.program_id(2) == kt - 1)
            def _store():
                epilogue(acc_ref[...])
    return body


def matmul_fused(a, b, so, bo, relu=False, residual=None, in_sb=None,
                 out_dtype=_BF16):
    """a: (M, K), b: (K, N), so/bo: (1, N) f32, in_sb: optional ((1,K),(1,K))
    applied as relu(a*s+b) before the dot.  Returns (M, N) out_dtype."""
    M, K = a.shape
    K2, N = b.shape
    assert K == K2
    tm = _pick_tile(M, 1024, 16)
    tn = _pick_tile(N, 512, 128)
    tk = _pick_tile(K, 512, 128)
    assert M % tm == 0 and N % tn == 0 and K % tk == 0
    kt = K // tk
    has_in = in_sb is not None
    has_res = residual is not None
    kernel = _make_mm_kernel(kt, relu, has_res, has_in)

    if kt > 1:
        grid = (M // tm, N // tn, kt)
        a_spec = pl.BlockSpec((tm, tk), lambda i, j, k: (i, k))
        b_spec = pl.BlockSpec((tk, tn), lambda i, j, k: (k, j))
        k_spec = pl.BlockSpec((1, tk), lambda i, j, k: (0, k))
        n_spec = pl.BlockSpec((1, tn), lambda i, j, k: (0, j))
        mn_spec = pl.BlockSpec((tm, tn), lambda i, j, k: (i, j))
        sems = ("parallel", "parallel", "arbitrary")
        scratch = [pltpu.VMEM((tm, tn), jnp.float32)]
    else:
        grid = (M // tm, N // tn)
        a_spec = pl.BlockSpec((tm, tk), lambda i, j: (i, 0))
        b_spec = pl.BlockSpec((tk, tn), lambda i, j: (0, j))
        k_spec = pl.BlockSpec((1, tk), lambda i, j: (0, 0))
        n_spec = pl.BlockSpec((1, tn), lambda i, j: (0, j))
        mn_spec = pl.BlockSpec((tm, tn), lambda i, j: (i, j))
        sems = ("parallel", "parallel")
        scratch = []

    in_specs = [a_spec, b_spec]
    inputs = [a.astype(_BF16), b.astype(_BF16)]
    if has_in:
        si, bi = in_sb
        in_specs += [k_spec, k_spec]
        inputs += [si, bi]
    in_specs += [n_spec, n_spec]
    inputs += [so, bo]
    if has_res:
        in_specs.append(mn_spec)
        inputs.append(residual)

    return pl.pallas_call(
        kernel,
        out_shape=jax.ShapeDtypeStruct((M, N), out_dtype),
        grid_spec=pltpu.PrefetchScalarGridSpec(
            num_scalar_prefetch=0,
            grid=grid,
            in_specs=in_specs,
            out_specs=mn_spec,
            scratch_shapes=scratch),
        compiler_params=pltpu.CompilerParams(dimension_semantics=sems),
    )(*inputs)


# ----------------------------------------------------------------------------
# Kernel 2: fused "plane" 3x3 conv (stride 1), flat-window formulation.
# Input passed flattened (N, Hp*Wp, Cin); every tap is a contiguous window at a
# static flat offset (no slice+reshape copies).  Accumulation per small row
# group in registers; epilogue fuses BN scale/bias + ReLU + residual add.
# ----------------------------------------------------------------------------
def _plane_plan(H, W, Cin, Cout, d):
    Wp = W + 2 * d
    Lx = (H + 2 * d + 1) * Wp      # one extra bottom row for flat-window overrun
    tc_out = Cout
    # keep double-buffered weight tile <= ~8 MiB and <= 512 lanes
    while (tc_out > 128 and tc_out % 2 == 0
           and (tc_out > 512 or 9 * Cin * tc_out * 4 > 8 * 2**20)):
        tc_out //= 2
    rg = 1
    for cand in range(H, 0, -1):
        if H % cand == 0 and cand * Wp <= 512 and cand * Wp * tc_out * 4 <= 96 * 1024:
            rg = cand
            break
    return Wp, Lx, tc_out, rg


def _plane_fits(H, W, Cin, Cout, d, has_res, has_in):
    Wp, Lx, tc_out, rg = _plane_plan(H, W, Cin, Cout, d)
    if Cout % tc_out != 0:
        return False
    if tc_out % 128 != 0 and tc_out != Cout:
        return False
    total = (2 * Lx * Cin * 2                    # input plane (double buffered)
             + 2 * 9 * Cin * tc_out * 2          # weights
             + 4 * H * W * tc_out * 2            # output (+residual) blocks
             + (2 * H * W * tc_out * 2 if has_res else 0)
             + (Lx * Cin * 2 if has_in else 0))  # bn'd copy scratch
    return total <= 12 * 2**20


def _make_plane_kernel(taps, Wp, Wo, Ho, rg, relu, has_res, has_in):
    groups = Ho // rg
    L = rg * Wp

    def body(*refs):
        i = 2
        x_ref, w_ref = refs[0], refs[1]
        si_ref = bi_ref = m_ref = None
        if has_in:
            si_ref, bi_ref, m_ref = refs[2], refs[3], refs[4]
            i = 5
        so_ref, bo_ref = refs[i], refs[i + 1]
        i += 2
        r_ref = None
        if has_res:
            r_ref = refs[i]
            i += 1
        o_ref = refs[i]
        xb_ref = refs[i + 1] if has_in else None

        if has_in:
            # bn1+ReLU fused on the input; mask restores exact zero padding.
            xb_ref[...] = (jnp.maximum(
                x_ref[0].astype(jnp.float32) * si_ref[...] + bi_ref[...], 0.0)
                * m_ref[...]).astype(_BF16)

        for g in range(groups):
            acc = None
            for t, off in taps:
                start = g * rg * Wp + off
                if has_in:
                    a = xb_ref[start:start + L, :]
                else:
                    a = x_ref[0, start:start + L, :]
                p = jnp.dot(a, w_ref[t], preferred_element_type=jnp.float32)
                acc = p if acc is None else acc + p
            for r in range(rg):
                row = acc[r * Wp:r * Wp + Wo, :]
                y = row * so_ref[...] + bo_ref[...]
                if relu:
                    y = jnp.maximum(y, 0.0)
                orow = g * rg + r
                if has_res:
                    y = y + r_ref[0, orow, :, :].astype(jnp.float32)
                o_ref[0, orow, :, :] = y.astype(o_ref.dtype)
    return body


def conv3x3_plane(x, w, so, bo, relu, residual, dilation, in_sb=None):
    N, H, W, Cin = x.shape
    Cout = w.shape[0]
    d = dilation
    Ho, Wo = H, W
    Wp, Lx, tc_out, rg = _plane_plan(H, W, Cin, Cout, d)

    xp = jnp.pad(x, ((0, 0), (d, d + 1), (d, d), (0, 0))).astype(_BF16)
    x_flat = xp.reshape(N, Lx, Cin)
    wk = jnp.transpose(w, (2, 3, 1, 0)).reshape(9, Cin, Cout).astype(_BF16)

    has_in = in_sb is not None
    has_res = residual is not None
    taps = [(kh * 3 + kw, (kh * d) * Wp + kw * d)
            for kh in range(3) for kw in range(3)]
    kernel = _make_plane_kernel(taps, Wp, Wo, Ho, rg, relu, has_res, has_in)

    grid = (N, Cout // tc_out)
    in_specs = [
        pl.BlockSpec((1, Lx, Cin), lambda n, j: (n, 0, 0)),
        pl.BlockSpec((9, Cin, tc_out), lambda n, j: (0, 0, j)),
    ]
    inputs = [x_flat, wk]
    scratch = []
    if has_in:
        si, bi = in_sb
        hh = jnp.arange(H + 2 * d + 1)
        ww = jnp.arange(Wp)
        valid = (((hh >= d) & (hh < H + d))[:, None]
                 & ((ww >= d) & (ww < W + d))[None, :])
        mask = valid.astype(jnp.float32).reshape(Lx, 1)
        in_specs += [pl.BlockSpec((1, Cin), lambda n, j: (0, 0)),
                     pl.BlockSpec((1, Cin), lambda n, j: (0, 0)),
                     pl.BlockSpec((Lx, 1), lambda n, j: (0, 0))]
        inputs += [si, bi, mask]
        scratch = [pltpu.VMEM((Lx, Cin), _BF16)]
    in_specs += [pl.BlockSpec((1, tc_out), lambda n, j: (0, j)),
                 pl.BlockSpec((1, tc_out), lambda n, j: (0, j))]
    inputs += [so, bo]
    if has_res:
        in_specs.append(pl.BlockSpec((1, Ho, Wo, tc_out),
                                     lambda n, j: (n, 0, 0, j)))
        inputs.append(residual)

    return pl.pallas_call(
        kernel,
        out_shape=jax.ShapeDtypeStruct((N, Ho, Wo, Cout), _BF16),
        grid_spec=pltpu.PrefetchScalarGridSpec(
            num_scalar_prefetch=0,
            grid=grid,
            in_specs=in_specs,
            out_specs=pl.BlockSpec((1, Ho, Wo, tc_out),
                                   lambda n, j: (n, 0, 0, j)),
            scratch_shapes=scratch),
        compiler_params=pltpu.CompilerParams(
            dimension_semantics=("parallel", "arbitrary")),
    )(*inputs)


# ----------------------------------------------------------------------------
# Elementwise / pool / reduction kernels
# ----------------------------------------------------------------------------
def _bnrelu_kernel(x_ref, s_ref, b_ref, o_ref):
    y = x_ref[...].astype(jnp.float32) * s_ref[...] + b_ref[...]
    o_ref[...] = jnp.maximum(y, 0.0).astype(o_ref.dtype)


def bnrelu_sb(x, scale, bias):
    """Standalone BN(scale/bias)+ReLU (only used ahead of the im2col fallback)."""
    N, H, W, C = x.shape
    M = N * H * W
    xf = x.reshape(M, C)
    tm = _pick_tile(M, 1024, 16)
    tc = _pick_tile(C, 1024, 128)
    out = pl.pallas_call(
        _bnrelu_kernel,
        out_shape=jax.ShapeDtypeStruct((M, C), x.dtype),
        grid_spec=pltpu.PrefetchScalarGridSpec(
            num_scalar_prefetch=0,
            grid=(M // tm, C // tc),
            in_specs=[pl.BlockSpec((tm, tc), lambda i, j: (i, j)),
                      pl.BlockSpec((1, tc), lambda i, j: (0, j)),
                      pl.BlockSpec((1, tc), lambda i, j: (0, j))],
            out_specs=pl.BlockSpec((tm, tc), lambda i, j: (i, j))),
        compiler_params=pltpu.CompilerParams(
            dimension_semantics=("parallel", "parallel")),
    )(xf, scale, bias)
    return out.reshape(N, H, W, C)


def _make_maxpool_kernel(Ho, Wo):
    def kernel(p00, p01, p10, p11, o_ref):
        phases = ((p00, p01), (p10, p11))
        out = None
        for dh in range(3):
            for dw in range(3):
                pref = phases[dh % 2][dw % 2]
                tap = pref[0, dh // 2:dh // 2 + Ho, dw // 2:dw // 2 + Wo, :]
                out = tap if out is None else jnp.maximum(out, tap)
        o_ref[0] = out
    return kernel


def maxpool_3x3_s2_p1(x):
    """MaxPool2d(kernel=3, stride=2, padding=1): 4 stride-2 phase planes are
    split in XLA (1x traffic), the 3x3 max is done in-kernel from contiguous taps."""
    N, H, W, C = x.shape
    Ho = (H + 2 - 3) // 2 + 1
    Wo = (W + 2 - 3) // 2 + 1
    neg = jnp.finfo(x.dtype).min
    xp = jnp.pad(x, ((0, 0), (1, 1), (1, 1), (0, 0)), constant_values=neg)
    phases = []
    for a in range(2):
        for b in range(2):
            ph = xp[:, a::2, b::2, :]
            ph = jnp.pad(ph, ((0, 0), (0, Ho + 1 - ph.shape[1]),
                              (0, Wo + 1 - ph.shape[2]), (0, 0)),
                         constant_values=neg)
            phases.append(ph)
    tc = _pick_tile(C, 512, 128)
    p_spec = pl.BlockSpec((1, Ho + 1, Wo + 1, tc), lambda n, j: (n, 0, 0, j))
    return pl.pallas_call(
        _make_maxpool_kernel(Ho, Wo),
        out_shape=jax.ShapeDtypeStruct((N, Ho, Wo, C), x.dtype),
        grid_spec=pltpu.PrefetchScalarGridSpec(
            num_scalar_prefetch=0,
            grid=(N, C // tc),
            in_specs=[p_spec, p_spec, p_spec, p_spec],
            out_specs=pl.BlockSpec((1, Ho, Wo, tc), lambda n, j: (n, 0, 0, j))),
        compiler_params=pltpu.CompilerParams(
            dimension_semantics=("parallel", "parallel")),
    )(*phases)


def _gap_bnrelu_kernel(x_ref, s_ref, b_ref, o_ref):
    x = x_ref[...].astype(jnp.float32)
    y = jnp.maximum(x * s_ref[...][None] + b_ref[...][None], 0.0)
    o_ref[...] = jnp.mean(y, axis=1)


def global_avg_pool_bnrelu(x, scale, bias):
    """bn_out + ReLU + global average pool, fused."""
    N, H, W, C = x.shape
    xf = x.reshape(N, H * W, C)
    tc = _pick_tile(C, 512, 128)
    return pl.pallas_call(
        _gap_bnrelu_kernel,
        out_shape=jax.ShapeDtypeStruct((N, C), jnp.float32),
        grid_spec=pltpu.PrefetchScalarGridSpec(
            num_scalar_prefetch=0,
            grid=(C // tc,),
            in_specs=[pl.BlockSpec((N, H * W, tc), lambda j: (0, 0, j)),
                      pl.BlockSpec((1, tc), lambda j: (0, j)),
                      pl.BlockSpec((1, tc), lambda j: (0, j))],
            out_specs=pl.BlockSpec((N, tc), lambda j: (0, j))),
        compiler_params=pltpu.CompilerParams(
            dimension_semantics=("parallel",)),
    )(xf, scale, bias)


# ----------------------------------------------------------------------------
# Conv dispatcher: 1x1 / plane 3x3 / im2col fallback, all with fused pro/epilogue
# ----------------------------------------------------------------------------
def conv_bn_act(x, w, in_bn=None, out_bn=None, relu=False, residual=None,
                stride=1, dilation=1, padding=0):
    """x: (N,H,W,Cin) bf16, w: (Cout,Cin,KH,KW) f32 (PyTorch layout).
    Output = [fused in_bn+ReLU on input] -> conv -> [out_bn scale/bias] ->
    [ReLU] -> [+ residual]."""
    Cout, Cin, KH, KW = w.shape
    N, H, W, _ = x.shape
    so, bo = _bn_scale_bias(out_bn, Cout)
    in_sb = _bn_scale_bias(in_bn, Cin) if in_bn is not None else None

    if KH == 1 and KW == 1:
        xs = x[:, ::stride, ::stride, :] if stride > 1 else x
        _, Ho, Wo, _ = xs.shape
        a = xs.reshape(N * Ho * Wo, Cin)
        wm = w.reshape(Cout, Cin).T
        res = residual.reshape(N * Ho * Wo, Cout) if residual is not None else None
        out = matmul_fused(a, wm, so, bo, relu=relu, residual=res, in_sb=in_sb)
        return out.reshape(N, Ho, Wo, Cout)

    Ho = (H + 2 * padding - dilation * (KH - 1) - 1) // stride + 1
    Wo = (W + 2 * padding - dilation * (KW - 1) - 1) // stride + 1

    if (stride == 1 and padding == dilation and KH == 3 and KW == 3
            and Cin >= 32
            and _plane_fits(H, W, Cin, Cout, dilation,
                            residual is not None, in_sb is not None)):
        return conv3x3_plane(x, w, so, bo, relu, residual, dilation, in_sb=in_sb)

    # im2col fallback (strided 3x3 convs, tiny Cin, oversized planes).
    # TODO(synk): a phase-split plane kernel would remove this HBM im2col for
    # strided 3x3 convolutions too.
    if in_sb is not None:
        x = bnrelu_sb(x, *in_sb)
    xp = jnp.pad(x, ((0, 0), (padding, padding), (padding, padding), (0, 0)))
    taps = []
    for kh in range(KH):
        for kw in range(KW):
            h0, w0 = kh * dilation, kw * dilation
            taps.append(xp[:, h0:h0 + stride * (Ho - 1) + 1:stride,
                           w0:w0 + stride * (Wo - 1) + 1:stride, :])
    a = jnp.stack(taps, axis=3).reshape(N * Ho * Wo, KH * KW * Cin).astype(_BF16)
    wm = jnp.transpose(w, (2, 3, 1, 0)).reshape(KH * KW * Cin, Cout)
    res = residual.reshape(N * Ho * Wo, Cout) if residual is not None else None
    out = matmul_fused(a, wm, so, bo, relu=relu, residual=res)
    return out.reshape(N, Ho, Wo, Cout)


# ----------------------------------------------------------------------------
# Parameter construction (deterministic, synthetic)
# ----------------------------------------------------------------------------
class ParamGen:
    def __init__(self, key):
        self._key = key
        self._i = 0

    def _next(self):
        self._i += 1
        return jax.random.fold_in(self._key, self._i)

    def conv(self, cout, cin, kh, kw):
        fan_in = cin * kh * kw
        return jax.random.normal(self._next(), (cout, cin, kh, kw),
                                 jnp.float32) / np.sqrt(fan_in)

    def bn(self, c):
        g = 1.0 + 0.1 * jax.random.normal(self._next(), (c,), jnp.float32)
        b = 0.1 * jax.random.normal(self._next(), (c,), jnp.float32)
        m = 0.05 * jax.random.normal(self._next(), (c,), jnp.float32)
        v = 1.0 + 0.1 * jax.random.uniform(self._next(), (c,), jnp.float32)
        return (g, b, m, v)

    def linear(self, out_f, in_f):
        w = jax.random.normal(self._next(), (out_f, in_f),
                              jnp.float32) / np.sqrt(in_f)
        b = 0.1 * jax.random.normal(self._next(), (out_f,), jnp.float32)
        return (w, b)


CHANNELS = [(128, 128), (256, 256), (512, 512),
            (512, 1024), (512, 1024, 2048), (1024, 2048, 4096)]


def make_block_params(pg, in_ch, chans, stride):
    p = {'bn1': pg.bn(in_ch)}
    if len(chans) == 2:
        p['conv1'] = pg.conv(chans[0], in_ch, 3, 3)
        p['bn2'] = pg.bn(chans[0])
        p['conv2'] = pg.conv(chans[1], chans[0], 3, 3)
    else:
        p['conv1'] = pg.conv(chans[0], in_ch, 1, 1)
        p['bn2'] = pg.bn(chans[0])
        p['conv2'] = pg.conv(chans[1], chans[0], 3, 3)
        p['bn3'] = pg.bn(chans[1])
        p['conv3'] = pg.conv(chans[2], chans[1], 1, 1)
    if stride != 1 or in_ch != chans[-1]:
        p['proj'] = pg.conv(chans[-1], in_ch, 1, 1)
    return p


def build_wider_resnet_a2_params(structure, classes=0, dilation=False, key=None):
    if len(structure) != 6:
        raise ValueError('Expected a structure with six values')
    pg = ParamGen(key)
    params = {'mod1_conv': pg.conv(64, 3, 3, 3)}
    in_ch = 64
    mods = []
    for mod_id, num in enumerate(structure):
        blocks = []
        for block_id in range(num):
            if not dilation:
                dil = 1
                stride = 2 if block_id == 0 and 2 <= mod_id <= 4 else 1
            else:
                if mod_id == 3:
                    dil = 2
                elif mod_id > 3:
                    dil = 4
                else:
                    dil = 1
                stride = 2 if block_id == 0 and mod_id == 2 else 1
            chans = CHANNELS[mod_id]
            blocks.append({'params': make_block_params(pg, in_ch, chans, stride),
                           'stride': stride, 'dil': dil})
            in_ch = chans[-1]
        mods.append(blocks)
    params['mods'] = mods
    params['bn_out'] = pg.bn(in_ch)
    if classes != 0:
        params['fc'] = pg.linear(classes, in_ch)
    return params


# ----------------------------------------------------------------------------
# Forward pass
# ----------------------------------------------------------------------------
def identity_residual_block(x, p, stride, dilation):
    bn1 = p['bn1']
    if 'proj' in p:
        shortcut = conv_bn_act(x, p['proj'], in_bn=bn1, stride=stride)
    else:
        shortcut = x
    if 'conv3' in p:  # bottleneck: 1x1 -> bn2/relu -> 3x3 -> bn3/relu -> 1x1 (+res)
        out = conv_bn_act(x, p['conv1'], in_bn=bn1, out_bn=p['bn2'], relu=True,
                          stride=stride)
        out = conv_bn_act(out, p['conv2'], out_bn=p['bn3'], relu=True,
                          dilation=dilation, padding=dilation)
        # TODO(synk): Dropout2d (mod6/mod7) is train-mode stochastic; inference identity here.
        out = conv_bn_act(out, p['conv3'], residual=shortcut)
    else:             # two 3x3 convolutions: 3x3 -> bn2/relu -> 3x3 (+res)
        out = conv_bn_act(x, p['conv1'], in_bn=bn1, out_bn=p['bn2'], relu=True,
                          stride=stride, dilation=dilation, padding=dilation)
        out = conv_bn_act(out, p['conv2'], dilation=dilation, padding=dilation,
                          residual=shortcut)
    return out


def wider_resnet_a2_forward(img_nchw, params):
    # layout: PyTorch NCHW -> internal NHWC (channels on the lane dim), bf16 activations.
    x = jnp.transpose(img_nchw, (0, 2, 3, 1)).astype(_BF16)
    x = conv_bn_act(x, params['mod1_conv'], stride=1, padding=1)      # mod1
    for mod_id, blocks in enumerate(params['mods']):                  # mod2..mod7
        if mod_id < 2:
            x = maxpool_3x3_s2_p1(x)                                  # pool2, pool3
        for blk in blocks:
            x = identity_residual_block(x, blk['params'], blk['stride'], blk['dil'])
    s_out, b_out = _bn_scale_bias(params['bn_out'], x.shape[-1])
    if 'fc' in params:
        pooled = global_avg_pool_bnrelu(x, s_out, b_out)              # bn_out + GAP
        w, b = params['fc']
        classes = w.shape[0]
        logits = matmul_fused(pooled.astype(_BF16), w.T.astype(_BF16),
                              jnp.ones((1, classes), jnp.float32),
                              b.reshape(1, classes).astype(jnp.float32),
                              out_dtype=jnp.float32)                  # nn.Linear
        return logits
    x = bnrelu_sb(x, s_out, b_out)                                    # bn_out
    return jnp.transpose(x.astype(jnp.float32), (0, 3, 1, 2))         # back to NCHW


# ----------------------------------------------------------------------------
if __name__ == "__main__":
    base_key = jax.random.PRNGKey(0)
    structure = [1, 1, 1, 1, 1, 1]   # one IdentityResidualBlock per module (small)
    classes = 8

    params = build_wider_resnet_a2_params(
        structure, classes=classes, dilation=False,
        key=jax.random.fold_in(base_key, 1))

    img = jax.random.normal(jax.random.fold_in(base_key, 2),
                            (2, 3, 64, 64), jnp.float32)

    out = wider_resnet_a2_forward(img, params)
    out = jax.block_until_ready(out)
    assert out.shape == (2, classes)
    assert out.dtype == jnp.float32
    print("KERNEL_OK")
</pallas_src>

<mosaic_0001>
module attributes {stable_mosaic.version = 11 : i64} {
  func.func @body(%arg0: i32, %arg1: i32, %arg2: memref<1024x27xbf16, #tpu.memory_space<vmem>>, %arg3: memref<27x64xbf16, #tpu.memory_space<vmem>>, %arg4: memref<1x64xf32, #tpu.memory_space<vmem>>, %arg5: memref<1x64xf32, #tpu.memory_space<vmem>>, %arg6: memref<1024x64xbf16, #tpu.memory_space<vmem>>) attributes {dimension_semantics = [#tpu.dimension_semantics<parallel>, #tpu.dimension_semantics<parallel>], iteration_bounds = array<i64: 8, 1>, scalar_prefetch = 0 : i64, scratch_operands = 0 : i64, tpu.core_type = #tpu.core_type<tc>, window_params = [{transform_indices = @transform_0, window_bounds = array<i64: 1024, 27>}, {transform_indices = @transform_1, window_bounds = array<i64: 27, 64>}, {transform_indices = @transform_2, window_bounds = array<i64: 1, 64>}, {transform_indices = @transform_3, window_bounds = array<i64: 1, 64>}, {transform_indices = @transform_4, window_bounds = array<i64: 1024, 64>}]} {
    %c0 = arith.constant 0 : index
    %c0_0 = arith.constant 0 : index
    %0 = vector.load %arg2[%c0, %c0_0] : memref<1024x27xbf16, #tpu.memory_space<vmem>>, vector<1024x27xbf16>
    %c0_1 = arith.constant 0 : index
    %c0_2 = arith.constant 0 : index
    %1 = vector.load %arg3[%c0_1, %c0_2] : memref<27x64xbf16, #tpu.memory_space<vmem>>, vector<27x64xbf16>
    %cst = arith.constant dense<0.000000e+00> : vector<1024x64xf32>
    %2 = tpu.matmul %0, %1, %cst {dimension_numbers = #tpu.dot_dimension_numbers<[1], [0], [0], [1], [0, 0, 1, 1], [], []>} : vector<1024x27xbf16>, vector<27x64xbf16>, vector<1024x64xf32> -> vector<1024x64xf32>
    %c0_3 = arith.constant 0 : index
    %c0_4 = arith.constant 0 : index
    %3 = vector.load %arg4[%c0_3, %c0_4] : memref<1x64xf32, #tpu.memory_space<vmem>>, vector<1x64xf32>
    %4 = vector.broadcast %3 : vector<1x64xf32> to vector<1024x64xf32>
    %5 = arith.mulf %2, %4 : vector<1024x64xf32>
    %c0_5 = arith.constant 0 : index
    %c0_6 = arith.constant 0 : index
    %6 = vector.load %arg5[%c0_5, %c0_6] : memref<1x64xf32, #tpu.memory_space<vmem>>, vector<1x64xf32>
    %7 = vector.broadcast %6 : vector<1x64xf32> to vector<1024x64xf32>
    %8 = arith.addf %5, %7 : vector<1024x64xf32>
    %9 = arith.truncf %8 : vector<1024x64xf32> to vector<1024x64xbf16>
    %c0_7 = arith.constant 0 : index
    %c0_8 = arith.constant 0 : index
    %10 = vector.load %arg6[%c0_7, %c0_8] : memref<1024x64xbf16, #tpu.memory_space<vmem>>, vector<1024x64xbf16>
    tpu.vector_store %arg6[%c0_7, %c0_8], %9 {strides = array<i32>} : memref<1024x64xbf16, #tpu.memory_space<vmem>>, vector<1024x64xbf16>,
    return
  }
  func.func @transform_0(%arg0: i32, %arg1: i32) -> (i32, i32) {
    %c0_i32 = arith.constant 0 : i32
    %c0_i32_0 = arith.constant 0 : i32
    return %arg0, %c0_i32 : i32, i32
  }
  func.func @transform_1(%arg0: i32, %arg1: i32) -> (i32, i32) {
    %c0_i32 = arith.constant 0 : i32
    %c0_i32_0 = arith.constant 0 : i32
    return %c0_i32, %arg1 : i32, i32
  }
  func.func @transform_2(%arg0: i32, %arg1: i32) -> (i32, i32) {
    %c0_i32 = arith.constant 0 : i32
    %c0_i32_0 = arith.constant 0 : i32
    return %c0_i32, %arg1 : i32, i32
  }
  func.func @transform_3(%arg0: i32, %arg1: i32) -> (i32, i32) {
    %c0_i32 = arith.constant 0 : i32
    %c0_i32_0 = arith.constant 0 : i32
    return %c0_i32, %arg1 : i32, i32
  }
  func.func @transform_4(%arg0: i32, %arg1: i32) -> (i32, i32) {
    %c0_i32 = arith.constant 0 : i32
    return %arg0, %arg1 : i32, i32
  }
}

</mosaic_0001>

<bundles_post_ra>
// kernel: tpu_custom_call.1
= control target key start
LH: loop header
LB: loop body
LE: loop exit
PB: predicated region body
PF: predicated region fallthrough
CT: control target
= control target key end

     0   :  { %s3247_s15 = smov 0   ;;  %s3249_s16 = smov 0   ;;  %s3957_s0 = inlined_call_operand.vmem [shape: bf16[8192,27], index: 0, kind: input, shape index: {}]   ;;  %s3958_s1 = inlined_call_operand.vmem [shape: bf16[27,64], index: 1, kind: input, shape index: {}]   ;;  %s3959_s2 = inlined_call_operand.vmem [shape: f32[1,64], index: 2, kind: input, shape index: {}]   ;;  %s3960_s3 = inlined_call_operand.vmem [shape: f32[1,64], index: 3, kind: input, shape index: {}]   ;;  %s3961_s4 = inlined_call_operand.vmem [shape: bf16[8192,64], index: 4, kind: output, shape index: {}]  }
   0x1   :  { %s3251_s17 = smov 0  }
   0x2 LB: > { %s26_s18 = sadd.s32 1, %s3215_s16  ;;  %p2507_p0 = scmp.ge.s32.totalorder %s3219_s17, 1  ;;  %s3219_s17 = sphi %s3251_s17, %s14_s17   ;;  %s3215_s16 = sphi %s3249_s16, %s3963_s16   ;;  %s3211_s15 = sphi %s3247_s15, %s3962_s15  }
   0x3   : > { %p28_p1 = scmp.ge.s32.totalorder %s26_s18, 8  ;;  %p202_p2 = scmp.lt.s32.totalorder %s3219_s17, 9 }
   0x5   : > { %s3965_s18 = smov (%p28_p1, %s26_s18), 0  ;;  %p203_p3 = pnand %p2507_p0, %p202_p2 }
   0x6   : > { %v3129_v0 = vld [vmem:[%s3958_s1] sm:$0xff] (!%p203_p3)   ;;  %vm923_vm0 = vcmask (!%p203_p3), 1044480   ;;  %v3130_v1 = vld [vmem:[%s3958_s1 + $0x8] sm:$0x3f] (!%p203_p3)   ;;  %vm924_vm1 = vcmask (!%p203_p3), 1045504   ;;  %s2508_s23 = sshll.u32 (!%p203_p3), %s3211_s15, 7 }
   0x7   : > { %206 = sbr.rel (%p203_p3) target bundleno = 362 (0x16a), region = 36  ;;  %2968 = vmatprep.subr.bf16.mxu0 (!%p203_p3), %v3129_v0  ;;  %3100 = vmatprep.subr.bf16.mxu1 (!%p203_p3), %v3129_v0  ;;  %v3221_v2 = vmov (!%p203_p3), 65535   ;;  %p242_p4 = scmp.lt.s32.totalorder (!%p203_p3), %s2508_s23, 1023  ;;  %vm730_vm2 = vcmask (!%p203_p3), 220160   ;;  %vm2257_vm3 = vcmask (!%p203_p3), 519168  }
   0x8   : > { %2969 = vmatpush3.bf16.msra.mxu0 (!%p203_p3), %v3129_v0  ;;  %3102 = vmatpush3.bf16.msra.mxu1 (!%p203_p3), %v3129_v0  ;;  %v925_v3 = vsel (!%p203_p3), %vm923_vm0, 4294967295, %v3221_v2 }
   0x9   : > { %v926_v4 = vsel (!%p203_p3), %vm924_vm1, %v925_v3, 0 }
   0xa   : > { %v928_v5 = vand.u32 (!%p203_p3), %v3130_v1, %v926_v4 }
   0xc   : > { %2970 = vmatprep.subr.bf16.mxu0 (!%p203_p3), %v928_v5  ;;  %3101 = vmatprep.subr.bf16.mxu1 (!%p203_p3), %v928_v5 }
   0xd   : > { %2971 = vmatpush3.bf16.msra.mxu0 (!%p203_p3), %v928_v5  ;;  %3103 = vmatpush3.bf16.msra.mxu1 (!%p203_p3), %v928_v5 }
   0xe   : > { %s3967_s23 = smov (!%p242_p4, %s2508_s23), 1023 }
   0xf   : > { %s2509_s24 = sshll.u32 %s3967_s23, 2 }
  0x10   : > { %s3279_s27 = scalar_lea.vmem %s3957_s0, %s2509_s24  ;;  %s3430_s8 = scalar_lea.vmem %s3961_s4, %s2509_s24 }
  0x11   : > { %v3131_v6 = vld [vmem:[%s3279_s27] sm:$0xff]   ;;  %v3133_v8 = vld [vmem:[%s3279_s27 + $0x8] sm:$0xff]   ;;  %v3135_v10 = vld [vmem:[%s3279_s27 + $0x10] sm:$0xff]  }
  0x12   : > { %v3132_v7 = vld [vmem:[%s3279_s27 + $0x100] sm:$0xff]   ;;  %2972 = vmatprep.mubr.msk.bf16.mxu0 %vm730_vm2, %v3131_v6  ;;  %v3134_v9 = vld [vmem:[%s3279_s27 + $0x108] sm:$0xff]   ;;  %v3136_v11 = vld [vmem:[%s3279_s27 + $0x110] sm:$0xff]  }
  0x13   : > { %3036 = vmatprep.mubr.msk.bf16.mxu1 %vm730_vm2, %v3132_v7  ;;  %2973 = vmatmul.mubr.msk.bf16.vlgmr.msra.gmra.mrb[0].mxu0 %vm730_vm2, %v3133_v8  ;;  %v3137_v12 = vld [vmem:[%s3279_s27 + $0x18] sm:$0xff]   ;;  %v3139_v14 = vld [vmem:[%s3279_s27 + $0x20] sm:$0xff]   ;;  %v3141_v16 = vld [vmem:[%s3279_s27 + $0x28] sm:$0xff]  }
  0x14   : > { %3037 = vmatmul.mubr.msk.bf16.vlgmr.msra.gmra.mrb[0].mxu1 %vm730_vm2, %v3134_v9  ;;  %2976 = vmatprep.mubr.msk.bf16.mxu0 %vm730_vm2, %v3135_v10  ;;  %v3138_v13 = vld [vmem:[%s3279_s27 + $0x118] sm:$0xff]   ;;  %v3140_v15 = vld [vmem:[%s3279_s27 + $0x120] sm:$0xff]   ;;  %v3142_v17 = vld [vmem:[%s3279_s27 + $0x128] sm:$0xff]  }
  0x15   : > { %3040 = vmatprep.mubr.msk.bf16.mxu1 %vm730_vm2, %v3136_v11  ;;  %v3143_v18 = vld [vmem:[%s3279_s27 + $0x30] sm:$0xff]   ;;  %v3145_v20 = vld [vmem:[%s3279_s27 + $0x38] sm:$0xff]   ;;  %v3147_v22 = vld [vmem:[%s3279_s27 + $0x40] sm:$0xff]  }
  0x16   : > { %v3144_v19 = vld [vmem:[%s3279_s27 + $0x130] sm:$0xff]   ;;  %v3146_v21 = vld [vmem:[%s3279_s27 + $0x138] sm:$0xff]   ;;  %v3148_v23 = vld [vmem:[%s3279_s27 + $0x140] sm:$0xff]  }
  0x17   : > { %v3149_v24 = vld [vmem:[%s3279_s27 + $0x48] sm:$0xff]   ;;  %v3151_v26 = vld [vmem:[%s3279_s27 + $0x50] sm:$0xff]   ;;  %v3153_v28 = vld [vmem:[%s3279_s27 + $0x58] sm:$0xff]  }
  0x18   : > { %v3150_v25 = vld [vmem:[%s3279_s27 + $0x148] sm:$0xff]   ;;  %v3152_v27 = vld [vmem:[%s3279_s27 + $0x150] sm:$0xff]   ;;  %v3154_v29 = vld [vmem:[%s3279_s27 + $0x158] sm:$0xff]  }
  0x19   : > { %v3155_v30 = vld [vmem:[%s3279_s27 + $0x60] sm:$0xff]   ;;  %v3157_v32 = vld [vmem:[%s3279_s27 + $0x68] sm:$0xff]   ;;  %v3159_v34 = vld [vmem:[%s3279_s27 + $0x70] sm:$0xff]  }
  0x1a   : > { %v3156_v31 = vld [vmem:[%s3279_s27 + $0x160] sm:$0xff]   ;;  %v3158_v33 = vld [vmem:[%s3279_s27 + $0x168] sm:$0xff]   ;;  %v3160_v35 = vld [vmem:[%s3279_s27 + $0x170] sm:$0xff]  }
  0x1b   : > { %2977 = vmatmul.mubr.msk.bf16.gmra.mrb[4].mxu0 %vm730_vm2, %v3137_v12  ;;  %v3161_v36 = vld [vmem:[%s3279_s27 + $0x78] sm:$0xff]   ;;  %v3163_v38 = vld [vmem:[%s3279_s27 + $0x80] sm:$0xff]   ;;  %v3165_v40 = vld [vmem:[%s3279_s27 + $0x88] sm:$0xff]  }
  0x1c   : > { %3041 = vmatmul.mubr.msk.bf16.gmra.mrb[4].mxu1 %vm730_vm2, %v3138_v13  ;;  %2980 = vmatprep.mubr.msk.bf16.mxu0 %vm730_vm2, %v3139_v14  ;;  %v3162_v37 = vld [vmem:[%s3279_s27 + $0x178] sm:$0xff]   ;;  %v3164_v39 = vld [vmem:[%s3279_s27 + $0x180] sm:$0xff]   ;;  %v3166_v41 = vld [vmem:[%s3279_s27 + $0x188] sm:$0xff]  }
  0x1d   : > { %3044 = vmatprep.mubr.msk.bf16.mxu1 %vm730_vm2, %v3140_v15  ;;  %v3167_v42 = vld [vmem:[%s3279_s27 + $0x90] sm:$0xff]   ;;  %v3169_v44 = vld [vmem:[%s3279_s27 + $0x98] sm:$0xff]   ;;  %v3171_v46 = vld [vmem:[%s3279_s27 + $0xa0] sm:$0xff]  }
  0x1e   : > { %v3168_v43 = vld [vmem:[%s3279_s27 + $0x190] sm:$0xff]   ;;  %v3170_v45 = vld [vmem:[%s3279_s27 + $0x198] sm:$0xff]   ;;  %v3172_v47 = vld [vmem:[%s3279_s27 + $0x1a0] sm:$0xff]  }
  0x1f   : > { %v3173_v48 = vld [vmem:[%s3279_s27 + $0xa8] sm:$0xff]   ;;  %v3175_v50 = vld [vmem:[%s3279_s27 + $0xb0] sm:$0xff]   ;;  %v3177_v52 = vld [vmem:[%s3279_s27 + $0xb8] sm:$0xff]  }
  0x20   : > { %v3174_v49 = vld [vmem:[%s3279_s27 + $0x1a8] sm:$0xff]   ;;  %v3176_v51 = vld [vmem:[%s3279_s27 + $0x1b0] sm:$0xff]   ;;  %v3178_v53 = vld [vmem:[%s3279_s27 + $0x1b8] sm:$0xff]  }
  0x21   : > { %v3179_v54 = vld [vmem:[%s3279_s27 + $0xc0] sm:$0xff]   ;;  %v3181_v56 = vld [vmem:[%s3279_s27 + $0xc8] sm:$0xff]   ;;  %v3183_v58 = vld [vmem:[%s3279_s27 + $0xd0] sm:$0xff]  }
  0x22   : > { %v3180_v55 = vld [vmem:[%s3279_s27 + $0x1c0] sm:$0xff]   ;;  %v3182_v57 = vld [vmem:[%s3279_s27 + $0x1c8] sm:$0xff]   ;;  %v3184_v59 = vld [vmem:[%s3279_s27 + $0x1d0] sm:$0xff]  }
  0x23   : > { %2981 = vmatmul.mubr.msk.bf16.gmra.mrb[8].mxu0 %vm730_vm2, %v3141_v16  ;;  %v3185_v60 = vld [vmem:[%s3279_s27 + $0xd8] sm:$0xff]   ;;  %v3187_v62 = vld [vmem:[%s3279_s27 + $0xe0] sm:$0xff]   ;;  %v3189_v0 = vld [vmem:[%s3279_s27 + $0xe8] sm:$0xff]  }
  0x24   : > { %3045 = vmatmul.mubr.msk.bf16.gmra.mrb[8].mxu1 %vm730_vm2, %v3142_v17  ;;  %2984 = vmatprep.mubr.msk.bf16.mxu0 %vm730_vm2, %v3143_v18  ;;  %v3186_v61 = vld [vmem:[%s3279_s27 + $0x1d8] sm:$0xff]   ;;  %v3188_v63 = vld [vmem:[%s3279_s27 + $0x1e0] sm:$0xff]   ;;  %v3190_v1 = vld [vmem:[%s3279_s27 + $0x1e8] sm:$0xff]  }
  0x25   : > { %3048 = vmatprep.mubr.msk.bf16.mxu1 %vm730_vm2, %v3144_v19  ;;  %v3191_v2 = vld [vmem:[%s3279_s27 + $0xf0] sm:$0xff]   ;;  %v3193_v4 = vld [vmem:[%s3279_s27 + $0xf8] sm:$0xff]   ;;  %v3412_v6 = vld [vmem:[%s3959_s2] ss:$0 sm:$0xff] }
  0x26   : > { %v3192_v3 = vld [vmem:[%s3279_s27 + $0x1f0] sm:$0xff]   ;;  %v3194_v5 = vld [vmem:[%s3279_s27 + $0x1f8] sm:$0xff]   ;;  %v3417_v8 = vld [vmem:[%s3960_s3] ss:$0 sm:$0xff] }
  0x2b   : > { %2985 = vmatmul.mubr.msk.bf16.gmra.mrb[12].mxu0 %vm730_vm2, %v3145_v20 }
  0x2c   : > { %3049 = vmatmul.mubr.msk.bf16.gmra.mrb[12].mxu1 %vm730_vm2, %v3146_v21  ;;  %2988 = vmatprep.mubr.msk.bf16.mxu0 %vm730_vm2, %v3147_v22 }
  0x2d   : > { %3052 = vmatprep.mubr.msk.bf16.mxu1 %vm730_vm2, %v3148_v23 }
  0x33   : > { %2989 = vmatmul.mubr.msk.bf16.gmra.mrb[16].mxu0 %vm730_vm2, %v3149_v24 }
  0x34   : > { %3053 = vmatmul.mubr.msk.bf16.gmra.mrb[16].mxu1 %vm730_vm2, %v3150_v25  ;;  %2992 = vmatprep.mubr.msk.bf16.mxu0 %vm730_vm2, %v3151_v26 }
  0x35   : > { %3056 = vmatprep.mubr.msk.bf16.mxu1 %vm730_vm2, %v3152_v27 }
  0x3b   : > { %2993 = vmatmul.mubr.msk.bf16.gmra.mrb[20].mxu0 %vm730_vm2, %v3153_v28 }
  0x3c   : > { %3057 = vmatmul.mubr.msk.bf16.gmra.mrb[20].mxu1 %vm730_vm2, %v3154_v29  ;;  %2996 = vmatprep.mubr.msk.bf16.mxu0 %vm730_vm2, %v3155_v30 }
  0x3d   : > { %3060 = vmatprep.mubr.msk.bf16.mxu1 %vm730_vm2, %v3156_v31 }
  0x43   : > { %2997 = vmatmul.mubr.msk.bf16.gmra.mrb[24].mxu0 %vm730_vm2, %v3157_v32 }
  0x44   : > { %3061 = vmatmul.mubr.msk.bf16.gmra.mrb[24].mxu1 %vm730_vm2, %v3158_v33  ;;  %3000 = vmatprep.mubr.msk.bf16.mxu0 %vm730_vm2, %v3159_v34 }
  0x45   : > { %3064 = vmatprep.mubr.msk.bf16.mxu1 %vm730_vm2, %v3160_v35 }
  0x4b   : > { %3001 = vmatmul.mubr.msk.bf16.gmra.mrb[28].mxu0 %vm730_vm2, %v3161_v36 }
  0x4c   : > { %3065 = vmatmul.mubr.msk.bf16.gmra.mrb[28].mxu1 %vm730_vm2, %v3162_v37  ;;  %3004 = vmatprep.mubr.msk.bf16.mxu0 %vm730_vm2, %v3163_v38 }
  0x4d   : > { %3068 = vmatprep.mubr.msk.bf16.mxu1 %vm730_vm2, %v3164_v39 }
  0x53   : > { %3005 = vmatmul.mubr.msk.bf16.gmra.mrb[32].mxu0 %vm730_vm2, %v3165_v40 }
  0x54   : > { %3069 = vmatmul.mubr.msk.bf16.gmra.mrb[32].mxu1 %vm730_vm2, %v3166_v41  ;;  %3008 = vmatprep.mubr.msk.bf16.mxu0 %vm730_vm2, %v3167_v42 }
  0x55   : > { %3072 = vmatprep.mubr.msk.bf16.mxu1 %vm730_vm2, %v3168_v43 }
  0x5b   : > { %3009 = vmatmul.mubr.msk.bf16.gmra.mrb[36].mxu0 %vm730_vm2, %v3169_v44 }
  0x5c   : > { %3073 = vmatmul.mubr.msk.bf16.gmra.mrb[36].mxu1 %vm730_vm2, %v3170_v45  ;;  %3012 = vmatprep.mubr.msk.bf16.mxu0 %vm730_vm2, %v3171_v46 }
  0x5d   : > { %3076 = vmatprep.mubr.msk.bf16.mxu1 %vm730_vm2, %v3172_v47 }
  0x63   : > { %3013 = vmatmul.mubr.msk.bf16.gmra.mrb[40].mxu0 %vm730_vm2, %v3173_v48 }
  0x64   : > { %3077 = vmatmul.mubr.msk.bf16.gmra.mrb[40].mxu1 %vm730_vm2, %v3174_v49  ;;  %3016 = vmatprep.mubr.msk.bf16.mxu0 %vm730_vm2, %v3175_v50 }
  0x65   : > { %3080 = vmatprep.mubr.msk.bf16.mxu1 %vm730_vm2, %v3176_v51 }
  0x6b   : > { %3017 = vmatmul.mubr.msk.bf16.gmra.mrb[44].mxu0 %vm730_vm2, %v3177_v52 }
  0x6c   : > { %3081 = vmatmul.mubr.msk.bf16.gmra.mrb[44].mxu1 %vm730_vm2, %v3178_v53  ;;  %3020 = vmatprep.mubr.msk.bf16.mxu0 %vm730_vm2, %v3179_v54 }
  0x6d   : > { %3084 = vmatprep.mubr.msk.bf16.mxu1 %vm730_vm2, %v3180_v55 }
  0x73   : > { %3021 = vmatmul.mubr.msk.bf16.gmra.mrb[48].mxu0 %vm730_vm2, %v3181_v56 }
  0x74   : > { %3085 = vmatmul.mubr.msk.bf16.gmra.mrb[48].mxu1 %vm730_vm2, %v3182_v57  ;;  %3024 = vmatprep.mubr.msk.bf16.mxu0 %vm730_vm2, %v3183_v58 }
  0x75   : > { %3088 = vmatprep.mubr.msk.bf16.mxu1 %vm730_vm2, %v3184_v59 }
  0x7b   : > { %3025 = vmatmul.mubr.msk.bf16.gmra.mrb[52].mxu0 %vm730_vm2, %v3185_v60 }
  0x7c   : > { %3089 = vmatmul.mubr.msk.bf16.gmra.mrb[52].mxu1 %vm730_vm2, %v3186_v61  ;;  %3028 = vmatprep.mubr.msk.bf16.mxu0 %vm730_vm2, %v3187_v62 }
  0x7d   : > { %3092 = vmatprep.mubr.msk.bf16.mxu1 %vm730_vm2, %v3188_v63 }
  0x83   : > { %3029 = vmatmul.mubr.msk.bf16.gmra.mrb[56].mxu0 %vm730_vm2, %v3189_v0 }
  0x84   : > { %3093 = vmatmul.mubr.msk.bf16.gmra.mrb[56].mxu1 %vm730_vm2, %v3190_v1  ;;  %3032 = vmatprep.mubr.msk.bf16.mxu0 %vm730_vm2, %v3191_v2 }
  0x85   : > { %3096 = vmatprep.mubr.msk.bf16.mxu1 %vm730_vm2, %v3192_v3 }
  0x8b   : > { %3033 = vmatmul.mubr.msk.bf16.gmra.mrb[60].mxu0 %vm730_vm2, %v3193_v4 }
  0x8c   : > { %3097 = vmatmul.mubr.msk.bf16.gmra.mrb[60].mxu1 %vm730_vm2, %v3194_v5 }
  0xe6   : > { %v2974_v7 = vpop.f32.mrb[0].mxu0 }
  0xe7   : > { %v1484_v9 = vmul.f32 %v2974_v7, %v3412_v6  ;;  %v3038_v10 = vpop.f32.mrb[0].mxu1  ;;  %v964_v11 = vpop.f32.mrb[1].mxu0 }
  0xe8   : > { %v1548_v12 = vmul.f32 %v3038_v10, %v3412_v6  ;;  %v1482_v13 = vmul.f32 %v3412_v6, %v964_v11  ;;  %v1220_v14 = vpop.f32.mrb[1].mxu1  ;;  %v2975_v15 = vpop.f32.mrb[2].mxu0 }
  0xe9   : > { %v1619_v16 = vadd.f32 %v3417_v8, %v1484_v9  ;;  %v1546_v17 = vmul.f32 %v3412_v6, %v1220_v14  ;;  %v1485_v18 = vmul.f32 %v2975_v15, %v3412_v6  ;;  %v3039_v19 = vpop.f32.mrb[2].mxu1  ;;  %v967_v20 = vpop.f32.mrb[3].mxu0 }
  0xea   : > { %v1683_v21 = vadd.f32 %v3417_v8, %v1548_v12  ;;  %v1617_v22 = vadd.f32 %v3417_v8, %v1482_v13  ;;  %v1549_v23 = vmul.f32 %v3039_v19, %v3412_v6  ;;  %v1483_v24 = vmul.f32 %v3412_v6, %v967_v20  ;;  %v1223_v25 = vpop.f32.mrb[3].mxu1 }
  0xeb   : > { %v2776_v26 = vpack.c.bf16 %v1619_v16, %v1619_v16  ;;  %v1681_v27 = vadd.f32 %v3417_v8, %v1546_v17  ;;  %v1620_v28 = vadd.f32 %v3417_v8, %v1485_v18  ;;  %v1547_v29 = vmul.f32 %v3412_v6, %v1223_v25 }
  0xec   : > { %v2840_v30 = vpack.c.bf16 %v1683_v21, %v1683_v21  ;;  %v2774_v31 = vpack.c.bf16 %v1617_v22, %v1617_v22  ;;  %v1684_v32 = vadd.f32 %v3417_v8, %v1549_v23  ;;  %v1618_v33 = vadd.f32 %v3417_v8, %v1483_v24 }
  0xed   : > { %2260 = vst.msk [vmem:[%s3430_s8 + $0x8] sm:$0xf] %vm2257_vm3, %v2776_v26  ;;  %v2838_v34 = vpack.c.bf16 %v1681_v27, %v1681_v27  ;;  %v2777_v35 = vpack.c.bf16 %v1620_v28, %v1620_v28  ;;  %v1682_v36 = vadd.f32 %v3417_v8, %v1547_v29 }
  0xee   : > { %2324 = vst.msk [vmem:[%s3430_s8 + $0x108] sm:$0xf] %vm2257_vm3, %v2840_v30  ;;  %2258 = vst.msk [vmem:[%s3430_s8] sm:$0xf] %vm2257_vm3, %v2774_v31  ;;  %v2841_v37 = vpack.c.bf16 %v1684_v32, %v1684_v32  ;;  %v2775_v38 = vpack.c.bf16 %v1618_v33, %v1618_v33  ;;  %v2978_v39 = vpop.f32.mrb[4].mxu0 }
  0xef   : > { %2322 = vst.msk [vmem:[%s3430_s8 + $0x100] sm:$0xf] %vm2257_vm3, %v2838_v34  ;;  %2261 = vst.msk [vmem:[%s3430_s8 + $0xc] sm:$0xf] %vm2257_vm3, %v2777_v35  ;;  %v2839_v40 = vpack.c.bf16 %v1682_v36, %v1682_v36  ;;  %v1488_v41 = vmul.f32 %v2978_v39, %v3412_v6  ;;  %v3042_v42 = vpop.f32.mrb[4].mxu1  ;;  %v980_v43 = vpop.f32.mrb[5].mxu0 }
  0xf0   : > { %2325 = vst.msk [vmem:[%s3430_s8 + $0x10c] sm:$0xf] %vm2257_vm3, %v2841_v37  ;;  %2259 = vst.msk [vmem:[%s3430_s8 + $0x4] sm:$0xf] %vm2257_vm3, %v2775_v38  ;;  %v1552_v44 = vmul.f32 %v3042_v42, %v3412_v6  ;;  %v1486_v45 = vmul.f32 %v3412_v6, %v980_v43  ;;  %v1236_v46 = vpop.f32.mrb[5].mxu1  ;;  %v2979_v47 = vpop.f32.mrb[6].mxu0 }
  0xf1   : > { %2323 = vst.msk [vmem:[%s3430_s8 + $0x104] sm:$0xf] %vm2257_vm3, %v2839_v40  ;;  %v1623_v48 = vadd.f32 %v3417_v8, %v1488_v41  ;;  %v1550_v49 = vmul.f32 %v3412_v6, %v1236_v46  ;;  %v1489_v50 = vmul.f32 %v2979_v47, %v3412_v6  ;;  %v3043_v51 = vpop.f32.mrb[6].mxu1  ;;  %v983_v52 = vpop.f32.mrb[7].mxu0 }
  0xf2   : > { %v1687_v53 = vadd.f32 %v3417_v8, %v1552_v44  ;;  %v1621_v54 = vadd.f32 %v3417_v8, %v1486_v45  ;;  %v1553_v55 = vmul.f32 %v3043_v51, %v3412_v6  ;;  %v1487_v56 = vmul.f32 %v3412_v6, %v983_v52  ;;  %v1239_v57 = vpop.f32.mrb[7].mxu1 }
  0xf3   : > { %v2780_v58 = vpack.c.bf16 %v1623_v48, %v1623_v48  ;;  %v1685_v59 = vadd.f32 %v3417_v8, %v1550_v49  ;;  %v1624_v60 = vadd.f32 %v3417_v8, %v1489_v50  ;;  %v1551_v61 = vmul.f32 %v3412_v6, %v1239_v57 }
  0xf4   : > { %v2844_v62 = vpack.c.bf16 %v1687_v53, %v1687_v53  ;;  %v2778_v63 = vpack.c.bf16 %v1621_v54, %v1621_v54  ;;  %v1688_v0 = vadd.f32 %v3417_v8, %v1553_v55  ;;  %v1622_v1 = vadd.f32 %v3417_v8, %v1487_v56 }
  0xf5   : > { %2264 = vst.msk [vmem:[%s3430_s8 + $0x18] sm:$0xf] %vm2257_vm3, %v2780_v58  ;;  %v2842_v2 = vpack.c.bf16 %v1685_v59, %v1685_v59  ;;  %v2781_v3 = vpack.c.bf16 %v1624_v60, %v1624_v60  ;;  %v1686_v4 = vadd.f32 %v3417_v8, %v1551_v61 }
  0xf6   : > { %2328 = vst.msk [vmem:[%s3430_s8 + $0x118] sm:$0xf] %vm2257_vm3, %v2844_v62  ;;  %2262 = vst.msk [vmem:[%s3430_s8 + $0x10] sm:$0xf] %vm2257_vm3, %v2778_v63  ;;  %v2845_v5 = vpack.c.bf16 %v1688_v0, %v1688_v0  ;;  %v2779_v7 = vpack.c.bf16 %v1622_v1, %v1622_v1  ;;  %v2982_v9 = vpop.f32.mrb[8].mxu0 }
  0xf7   : > { %2326 = vst.msk [vmem:[%s3430_s8 + $0x110] sm:$0xf] %vm2257_vm3, %v2842_v2  ;;  %2265 = vst.msk [vmem:[%s3430_s8 + $0x1c] sm:$0xf] %vm2257_vm3, %v2781_v3  ;;  %v2843_v10 = vpack.c.bf16 %v1686_v4, %v1686_v4  ;;  %v1492_v11 = vmul.f32 %v2982_v9, %v3412_v6  ;;  %v3046_v12 = vpop.f32.mrb[8].mxu1  ;;  %v996_v13 = vpop.f32.mrb[9].mxu0 }
  0xf8   : > { %2329 = vst.msk [vmem:[%s3430_s8 + $0x11c] sm:$0xf] %vm2257_vm3, %v2845_v5  ;;  %2263 = vst.msk [vmem:[%s3430_s8 + $0x14] sm:$0xf] %vm2257_vm3, %v2779_v7  ;;  %v1556_v14 = vmul.f32 %v3046_v12, %v3412_v6  ;;  %v1490_v15 = vmul.f32 %v3412_v6, %v996_v13  ;;  %v1252_v16 = vpop.f32.mrb[9].mxu1  ;;  %v2983_v17 = vpop.f32.mrb[10].mxu0 }
  0xf9   : > { %2327 = vst.msk [vmem:[%s3430_s8 + $0x114] sm:$0xf] %vm2257_vm3, %v2843_v10  ;;  %v1627_v18 = vadd.f32 %v3417_v8, %v1492_v11  ;;  %v1554_v19 = vmul.f32 %v3412_v6, %v1252_v16  ;;  %v1493_v20 = vmul.f32 %v2983_v17, %v3412_v6  ;;  %v3047_v21 = vpop.f32.mrb[10].mxu1  ;;  %v999_v22 = vpop.f32.mrb[11].mxu0 }
  0xfa   : > { %v1691_v23 = vadd.f32 %v3417_v8, %v1556_v14  ;;  %v1625_v24 = vadd.f32 %v3417_v8, %v1490_v15  ;;  %v1557_v25 = vmul.f32 %v3047_v21, %v3412_v6  ;;  %v1491_v26 = vmul.f32 %v3412_v6, %v999_v22  ;;  %v1255_v27 = vpop.f32.mrb[11].mxu1 }
  0xfb   : > { %v2784_v28 = vpack.c.bf16 %v1627_v18, %v1627_v18  ;;  %v1689_v29 = vadd.f32 %v3417_v8, %v1554_v19  ;;  %v1628_v30 = vadd.f32 %v3417_v8, %v1493_v20  ;;  %v1555_v31 = vmul.f32 %v3412_v6, %v1255_v27 }
  0xfc   : > { %v2848_v32 = vpack.c.bf16 %v1691_v23, %v1691_v23  ;;  %v2782_v33 = vpack.c.bf16 %v1625_v24, %v1625_v24  ;;  %v1692_v34 = vadd.f32 %v3417_v8, %v1557_v25  ;;  %v1626_v35 = vadd.f32 %v3417_v8, %v1491_v26 }
  0xfd   : > { %2268 = vst.msk [vmem:[%s3430_s8 + $0x28] sm:$0xf] %vm2257_vm3, %v2784_v28  ;;  %v2846_v36 = vpack.c.bf16 %v1689_v29, %v1689_v29  ;;  %v2785_v37 = vpack.c.bf16 %v1628_v30, %v1628_v30  ;;  %v1690_v38 = vadd.f32 %v3417_v8, %v1555_v31 }
  0xfe   : > { %2332 = vst.msk [vmem:[%s3430_s8 + $0x128] sm:$0xf] %vm2257_vm3, %v2848_v32  ;;  %2266 = vst.msk [vmem:[%s3430_s8 + $0x20] sm:$0xf] %vm2257_vm3, %v2782_v33  ;;  %v2849_v39 = vpack.c.bf16 %v1692_v34, %v1692_v34  ;;  %v2783_v40 = vpack.c.bf16 %v1626_v35, %v1626_v35  ;;  %v2986_v41 = vpop.f32.mrb[12].mxu0 }
  0xff   : > { %2330 = vst.msk [vmem:[%s3430_s8 + $0x120] sm:$0xf] %vm2257_vm3, %v2846_v36  ;;  %2269 = vst.msk [vmem:[%s3430_s8 + $0x2c] sm:$0xf] %vm2257_vm3, %v2785_v37  ;;  %v2847_v42 = vpack.c.bf16 %v1690_v38, %v1690_v38  ;;  %v1496_v43 = vmul.f32 %v2986_v41, %v3412_v6  ;;  %v3050_v44 = vpop.f32.mrb[12].mxu1  ;;  %v1012_v45 = vpop.f32.mrb[13].mxu0 }
 0x100   : > { %2333 = vst.msk [vmem:[%s3430_s8 + $0x12c] sm:$0xf] %vm2257_vm3, %v2849_v39  ;;  %2267 = vst.msk [vmem:[%s3430_s8 + $0x24] sm:$0xf] %vm2257_vm3, %v2783_v40  ;;  %v1560_v46 = vmul.f32 %v3050_v44, %v3412_v6  ;;  %v1494_v47 = vmul.f32 %v3412_v6, %v1012_v45  ;;  %v1268_v48 = vpop.f32.mrb[13].mxu1  ;;  %v2987_v49 = vpop.f32.mrb[14].mxu0 }
 0x101   : > { %2331 = vst.msk [vmem:[%s3430_s8 + $0x124] sm:$0xf] %vm2257_vm3, %v2847_v42  ;;  %v1631_v50 = vadd.f32 %v3417_v8, %v1496_v43  ;;  %v1558_v51 = vmul.f32 %v3412_v6, %v1268_v48  ;;  %v1497_v52 = vmul.f32 %v2987_v49, %v3412_v6  ;;  %v3051_v53 = vpop.f32.mrb[14].mxu1  ;;  %v1015_v54 = vpop.f32.mrb[15].mxu0 }
 0x102   : > { %v1695_v55 = vadd.f32 %v3417_v8, %v1560_v46  ;;  %v1629_v56 = vadd.f32 %v3417_v8, %v1494_v47  ;;  %v1561_v57 = vmul.f32 %v3051_v53, %v3412_v6  ;;  %v1495_v58 = vmul.f32 %v3412_v6, %v1015_v54  ;;  %v1271_v59 = vpop.f32.mrb[15].mxu1 }
 0x103   : > { %v2788_v60 = vpack.c.bf16 %v1631_v50, %v1631_v50  ;;  %v1693_v61 = vadd.f32 %v3417_v8, %v1558_v51  ;;  %v1632_v62 = vadd.f32 %v3417_v8, %v1497_v52  ;;  %v1559_v63 = vmul.f32 %v3412_v6, %v1271_v59 }
 0x104   : > { %v2852_v0 = vpack.c.bf16 %v1695_v55, %v1695_v55  ;;  %v2786_v1 = vpack.c.bf16 %v1629_v56, %v1629_v56  ;;  %v1696_v2 = vadd.f32 %v3417_v8, %v1561_v57  ;;  %v1630_v3 = vadd.f32 %v3417_v8, %v1495_v58 }
 0x105   : > { %2272 = vst.msk [vmem:[%s3430_s8 + $0x38] sm:$0xf] %vm2257_vm3, %v2788_v60  ;;  %v2850_v4 = vpack.c.bf16 %v1693_v61, %v1693_v61  ;;  %v2789_v5 = vpack.c.bf16 %v1632_v62, %v1632_v62  ;;  %v1694_v7 = vadd.f32 %v3417_v8, %v1559_v63 }
 0x106   : > { %2336 = vst.msk [vmem:[%s3430_s8 + $0x138] sm:$0xf] %vm2257_vm3, %v2852_v0  ;;  %2270 = vst.msk [vmem:[%s3430_s8 + $0x30] sm:$0xf] %vm2257_vm3, %v2786_v1  ;;  %v2853_v9 = vpack.c.bf16 %v1696_v2, %v1696_v2  ;;  %v2787_v10 = vpack.c.bf16 %v1630_v3, %v1630_v3  ;;  %v2990_v11 = vpop.f32.mrb[16].mxu0 }
 0x107   : > { %2334 = vst.msk [vmem:[%s3430_s8 + $0x130] sm:$0xf] %vm2257_vm3, %v2850_v4  ;;  %2273 = vst.msk [vmem:[%s3430_s8 + $0x3c] sm:$0xf] %vm2257_vm3, %v2789_v5  ;;  %v2851_v12 = vpack.c.bf16 %v1694_v7, %v1694_v7  ;;  %v1500_v13 = vmul.f32 %v2990_v11, %v3412_v6  ;;  %v3054_v14 = vpop.f32.mrb[16].mxu1  ;;  %v1028_v15 = vpop.f32.mrb[17].mxu0 }
 0x108   : > { %2337 = vst.msk [vmem:[%s3430_s8 + $0x13c] sm:$0xf] %vm2257_vm3, %v2853_v9  ;;  %2271 = vst.msk [vmem:[%s3430_s8 + $0x34] sm:$0xf] %vm2257_vm3, %v2787_v10  ;;  %v1564_v16 = vmul.f32 %v3054_v14, %v3412_v6  ;;  %v1498_v17 = vmul.f32 %v3412_v6, %v1028_v15  ;;  %v1284_v18 = vpop.f32.mrb[17].mxu1  ;;  %v2991_v19 = vpop.f32.mrb[18].mxu0 }
 0x109   : > { %2335 = vst.msk [vmem:[%s3430_s8 + $0x134] sm:$0xf] %vm2257_vm3, %v2851_v12  ;;  %v1635_v20 = vadd.f32 %v3417_v8, %v1500_v13  ;;  %v1562_v21 = vmul.f32 %v3412_v6, %v1284_v18  ;;  %v1501_v22 = vmul.f32 %v2991_v19, %v3412_v6  ;;  %v3055_v23 = vpop.f32.mrb[18].mxu1  ;;  %v1031_v24 = vpop.f32.mrb[19].mxu0 }
 0x10a   : > { %v1699_v25 = vadd.f32 %v3417_v8, %v1564_v16  ;;  %v1633_v26 = vadd.f32 %v3417_v8, %v1498_v17  ;;  %v1565_v27 = vmul.f32 %v3055_v23, %v3412_v6  ;;  %v1499_v28 = vmul.f32 %v3412_v6, %v1031_v24  ;;  %v1287_v29 = vpop.f32.mrb[19].mxu1 }
 0x10b   : > { %v2792_v30 = vpack.c.bf16 %v1635_v20, %v1635_v20  ;;  %v1697_v31 = vadd.f32 %v3417_v8, %v1562_v21  ;;  %v1636_v32 = vadd.f32 %v3417_v8, %v1501_v22  ;;  %v1563_v33 = vmul.f32 %v3412_v6, %v1287_v29 }
 0x10c   : > { %v2856_v34 = vpack.c.bf16 %v1699_v25, %v1699_v25  ;;  %v2790_v35 = vpack.c.bf16 %v1633_v26, %v1633_v26  ;;  %v1700_v36 = vadd.f32 %v3417_v8, %v1565_v27  ;;  %v1634_v37 = vadd.f32 %v3417_v8, %v1499_v28 }
 0x10d   : > { %2276 = vst.msk [vmem:[%s3430_s8 + $0x48] sm:$0xf] %vm2257_vm3, %v2792_v30  ;;  %v2854_v38 = vpack.c.bf16 %v1697_v31, %v1697_v31  ;;  %v2793_v39 = vpack.c.bf16 %v1636_v32, %v1636_v32  ;;  %v1698_v40 = vadd.f32 %v3417_v8, %v1563_v33 }
 0x10e   : > { %2340 = vst.msk [vmem:[%s3430_s8 + $0x148] sm:$0xf] %vm2257_vm3, %v2856_v34  ;;  %2274 = vst.msk [vmem:[%s3430_s8 + $0x40] sm:$0xf] %vm2257_vm3, %v2790_v35  ;;  %v2857_v41 = vpack.c.bf16 %v1700_v36, %v1700_v36  ;;  %v2791_v42 = vpack.c.bf16 %v1634_v37, %v1634_v37  ;;  %v2994_v43 = vpop.f32.mrb[20].mxu0 }
 0x10f   : > { %2338 = vst.msk [vmem:[%s3430_s8 + $0x140] sm:$0xf] %vm2257_vm3, %v2854_v38  ;;  %2277 = vst.msk [vmem:[%s3430_s8 + $0x4c] sm:$0xf] %vm2257_vm3, %v2793_v39  ;;  %v2855_v44 = vpack.c.bf16 %v1698_v40, %v1698_v40  ;;  %v1504_v45 = vmul.f32 %v2994_v43, %v3412_v6  ;;  %v3058_v46 = vpop.f32.mrb[20].mxu1  ;;  %v1044_v47 = vpop.f32.mrb[21].mxu0 }
 0x110   : > { %2341 = vst.msk [vmem:[%s3430_s8 + $0x14c] sm:$0xf] %vm2257_vm3, %v2857_v41  ;;  %2275 = vst.msk [vmem:[%s3430_s8 + $0x44] sm:$0xf] %vm2257_vm3, %v2791_v42  ;;  %v1568_v48 = vmul.f32 %v3058_v46, %v3412_v6  ;;  %v1502_v49 = vmul.f32 %v3412_v6, %v1044_v47  ;;  %v1300_v50 = vpop.f32.mrb[21].mxu1  ;;  %v2995_v51 = vpop.f32.mrb[22].mxu0 }
 0x111   : > { %2339 = vst.msk [vmem:[%s3430_s8 + $0x144] sm:$0xf] %vm2257_vm3, %v2855_v44  ;;  %v1639_v52 = vadd.f32 %v3417_v8, %v1504_v45  ;;  %v1566_v53 = vmul.f32 %v3412_v6, %v1300_v50  ;;  %v1505_v54 = vmul.f32 %v2995_v51, %v3412_v6  ;;  %v3059_v55 = vpop.f32.mrb[22].mxu1  ;;  %v1047_v56 = vpop.f32.mrb[23].mxu0 }
 0x112   : > { %v1703_v57 = vadd.f32 %v3417_v8, %v1568_v48  ;;  %v1637_v58 = vadd.f32 %v3417_v8, %v1502_v49  ;;  %v1569_v59 = vmul.f32 %v3059_v55, %v3412_v6  ;;  %v1503_v60 = vmul.f32 %v3412_v6, %v1047_v56  ;;  %v1303_v61 = vpop.f32.mrb[23].mxu1 }
 0x113   : > { %v2796_v62 = vpack.c.bf16 %v1639_v52, %v1639_v52  ;;  %v1701_v63 = vadd.f32 %v3417_v8, %v1566_v53  ;;  %v1640_v0 = vadd.f32 %v3417_v8, %v1505_v54  ;;  %v1567_v1 = vmul.f32 %v3412_v6, %v1303_v61 }
 0x114   : > { %v2860_v2 = vpack.c.bf16 %v1703_v57, %v1703_v57  ;;  %v2794_v3 = vpack.c.bf16 %v1637_v58, %v1637_v58  ;;  %v1704_v4 = vadd.f32 %v3417_v8, %v1569_v59  ;;  %v1638_v5 = vadd.f32 %v3417_v8, %v1503_v60 }
 0x115   : > { %2280 = vst.msk [vmem:[%s3430_s8 + $0x58] sm:$0xf] %vm2257_vm3, %v2796_v62  ;;  %v2858_v7 = vpack.c.bf16 %v1701_v63, %v1701_v63  ;;  %v2797_v9 = vpack.c.bf16 %v1640_v0, %v1640_v0  ;;  %v1702_v10 = vadd.f32 %v3417_v8, %v1567_v1 }
 0x116   : > { %2344 = vst.msk [vmem:[%s3430_s8 + $0x158] sm:$0xf] %vm2257_vm3, %v2860_v2  ;;  %2278 = vst.msk [vmem:[%s3430_s8 + $0x50] sm:$0xf] %vm2257_vm3, %v2794_v3  ;;  %v2861_v11 = vpack.c.bf16 %v1704_v4, %v1704_v4  ;;  %v2795_v12 = vpack.c.bf16 %v1638_v5, %v1638_v5  ;;  %v2998_v13 = vpop.f32.mrb[24].mxu0 }
 0x117   : > { %2342 = vst.msk [vmem:[%s3430_s8 + $0x150] sm:$0xf] %vm2257_vm3, %v2858_v7  ;;  %2281 = vst.msk [vmem:[%s3430_s8 + $0x5c] sm:$0xf] %vm2257_vm3, %v2797_v9  ;;  %v2859_v14 = vpack.c.bf16 %v1702_v10, %v1702_v10  ;;  %v1508_v15 = vmul.f32 %v2998_v13, %v3412_v6  ;;  %v3062_v16 = vpop.f32.mrb[24].mxu1  ;;  %v1060_v17 = vpop.f32.mrb[25].mxu0 }
 0x118   : > { %2345 = vst.msk [vmem:[%s3430_s8 + $0x15c] sm:$0xf] %vm2257_vm3, %v2861_v11  ;;  %2279 = vst.msk [vmem:[%s3430_s8 + $0x54] sm:$0xf] %vm2257_vm3, %v2795_v12  ;;  %v1572_v18 = vmul.f32 %v3062_v16, %v3412_v6  ;;  %v1506_v19 = vmul.f32 %v3412_v6, %v1060_v17  ;;  %v1316_v20 = vpop.f32.mrb[25].mxu1  ;;  %v2999_v21 = vpop.f32.mrb[26].mxu0 }
 0x119   : > { %2343 = vst.msk [vmem:[%s3430_s8 + $0x154] sm:$0xf] %vm2257_vm3, %v2859_v14  ;;  %v1643_v22 = vadd.f32 %v3417_v8, %v1508_v15  ;;  %v1570_v23 = vmul.f32 %v3412_v6, %v1316_v20  ;;  %v1509_v24 = vmul.f32 %v2999_v21, %v3412_v6  ;;  %v3063_v25 = vpop.f32.mrb[26].mxu1  ;;  %v1063_v26 = vpop.f32.mrb[27].mxu0 }
 0x11a   : > { %v1707_v27 = vadd.f32 %v3417_v8, %v1572_v18  ;;  %v1641_v28 = vadd.f32 %v3417_v8, %v1506_v19  ;;  %v1573_v29 = vmul.f32 %v3063_v25, %v3412_v6  ;;  %v1507_v30 = vmul.f32 %v3412_v6, %v1063_v26  ;;  %v1319_v31 = vpop.f32.mrb[27].mxu1 }
 0x11b   : > { %v2800_v32 = vpack.c.bf16 %v1643_v22, %v1643_v22  ;;  %v1705_v33 = vadd.f32 %v3417_v8, %v1570_v23  ;;  %v1644_v34 = vadd.f32 %v3417_v8, %v1509_v24  ;;  %v1571_v35 = vmul.f32 %v3412_v6, %v1319_v31 }
 0x11c   : > { %v2864_v36 = vpack.c.bf16 %v1707_v27, %v1707_v27  ;;  %v2798_v37 = vpack.c.bf16 %v1641_v28, %v1641_v28  ;;  %v1708_v38 = vadd.f32 %v3417_v8, %v1573_v29  ;;  %v1642_v39 = vadd.f32 %v3417_v8, %v1507_v30 }
 0x11d   : > { %2284 = vst.msk [vmem:[%s3430_s8 + $0x68] sm:$0xf] %vm2257_vm3, %v2800_v32  ;;  %v2862_v40 = vpack.c.bf16 %v1705_v33, %v1705_v33  ;;  %v2801_v41 = vpack.c.bf16 %v1644_v34, %v1644_v34  ;;  %v1706_v42 = vadd.f32 %v3417_v8, %v1571_v35 }
 0x11e   : > { %2348 = vst.msk [vmem:[%s3430_s8 + $0x168] sm:$0xf] %vm2257_vm3, %v2864_v36  ;;  %2282 = vst.msk [vmem:[%s3430_s8 + $0x60] sm:$0xf] %vm2257_vm3, %v2798_v37  ;;  %v2865_v43 = vpack.c.bf16 %v1708_v38, %v1708_v38  ;;  %v2799_v44 = vpack.c.bf16 %v1642_v39, %v1642_v39  ;;  %v3002_v45 = vpop.f32.mrb[28].mxu0 }
 0x11f   : > { %2346 = vst.msk [vmem:[%s3430_s8 + $0x160] sm:$0xf] %vm2257_vm3, %v2862_v40  ;;  %2285 = vst.msk [vmem:[%s3430_s8 + $0x6c] sm:$0xf] %vm2257_vm3, %v2801_v41  ;;  %v2863_v46 = vpack.c.bf16 %v1706_v42, %v1706_v42  ;;  %v1512_v47 = vmul.f32 %v3002_v45, %v3412_v6  ;;  %v3066_v48 = vpop.f32.mrb[28].mxu1  ;;  %v1076_v49 = vpop.f32.mrb[29].mxu0 }
 0x120   : > { %2349 = vst.msk [vmem:[%s3430_s8 + $0x16c] sm:$0xf] %vm2257_vm3, %v2865_v43  ;;  %2283 = vst.msk [vmem:[%s3430_s8 + $0x64] sm:$0xf] %vm2257_vm3, %v2799_v44  ;;  %v1576_v50 = vmul.f32 %v3066_v48, %v3412_v6  ;;  %v1510_v51 = vmul.f32 %v3412_v6, %v1076_v49  ;;  %v1332_v52 = vpop.f32.mrb[29].mxu1  ;;  %v3003_v53 = vpop.f32.mrb[30].mxu0 }
 0x121   : > { %2347 = vst.msk [vmem:[%s3430_s8 + $0x164] sm:$0xf] %vm2257_vm3, %v2863_v46  ;;  %v1647_v54 = vadd.f32 %v3417_v8, %v1512_v47  ;;  %v1574_v55 = vmul.f32 %v3412_v6, %v1332_v52  ;;  %v1513_v56 = vmul.f32 %v3003_v53, %v3412_v6  ;;  %v3067_v57 = vpop.f32.mrb[30].mxu1  ;;  %v1079_v58 = vpop.f32.mrb[31].mxu0 }
 0x122   : > { %v1711_v59 = vadd.f32 %v3417_v8, %v1576_v50  ;;  %v1645_v60 = vadd.f32 %v3417_v8, %v1510_v51  ;;  %v1577_v61 = vmul.f32 %v3067_v57, %v3412_v6  ;;  %v1511_v62 = vmul.f32 %v3412_v6, %v1079_v58  ;;  %v1335_v63 = vpop.f32.mrb[31].mxu1 }
 0x123   : > { %v2804_v0 = vpack.c.bf16 %v1647_v54, %v1647_v54  ;;  %v1709_v1 = vadd.f32 %v3417_v8, %v1574_v55  ;;  %v1648_v2 = vadd.f32 %v3417_v8, %v1513_v56  ;;  %v1575_v3 = vmul.f32 %v3412_v6, %v1335_v63 }
 0x124   : > { %v2868_v4 = vpack.c.bf16 %v1711_v59, %v1711_v59  ;;  %v2802_v5 = vpack.c.bf16 %v1645_v60, %v1645_v60  ;;  %v1712_v7 = vadd.f32 %v3417_v8, %v1577_v61  ;;  %v1646_v9 = vadd.f32 %v3417_v8, %v1511_v62 }
 0x125   : > { %2288 = vst.msk [vmem:[%s3430_s8 + $0x78] sm:$0xf] %vm2257_vm3, %v2804_v0  ;;  %v2866_v10 = vpack.c.bf16 %v1709_v1, %v1709_v1  ;;  %v2805_v11 = vpack.c.bf16 %v1648_v2, %v1648_v2  ;;  %v1710_v12 = vadd.f32 %v3417_v8, %v1575_v3 }
 0x126   : > { %2352 = vst.msk [vmem:[%s3430_s8 + $0x178] sm:$0xf] %vm2257_vm3, %v2868_v4  ;;  %2286 = vst.msk [vmem:[%s3430_s8 + $0x70] sm:$0xf] %vm2257_vm3, %v2802_v5  ;;  %v2869_v13 = vpack.c.bf16 %v1712_v7, %v1712_v7  ;;  %v2803_v14 = vpack.c.bf16 %v1646_v9, %v1646_v9  ;;  %v3006_v15 = vpop.f32.mrb[32].mxu0 }
 0x127   : > { %2350 = vst.msk [vmem:[%s3430_s8 + $0x170] sm:$0xf] %vm2257_vm3, %v2866_v10  ;;  %2289 = vst.msk [vmem:[%s3430_s8 + $0x7c] sm:$0xf] %vm2257_vm3, %v2805_v11  ;;  %v2867_v16 = vpack.c.bf16 %v1710_v12, %v1710_v12  ;;  %v1516_v17 = vmul.f32 %v3006_v15, %v3412_v6  ;;  %v3070_v18 = vpop.f32.mrb[32].mxu1  ;;  %v1092_v19 = vpop.f32.mrb[33].mxu0 }
 0x128   : > { %2353 = vst.msk [vmem:[%s3430_s8 + $0x17c] sm:$0xf] %vm2257_vm3, %v2869_v13  ;;  %2287 = vst.msk [vmem:[%s3430_s8 + $0x74] sm:$0xf] %vm2257_vm3, %v2803_v14  ;;  %v1580_v20 = vmul.f32 %v3070_v18, %v3412_v6  ;;  %v1514_v21 = vmul.f32 %v3412_v6, %v1092_v19  ;;  %v1348_v22 = vpop.f32.mrb[33].mxu1  ;;  %v3007_v23 = vpop.f32.mrb[34].mxu0 }
 0x129   : > { %2351 = vst.msk [vmem:[%s3430_s8 + $0x174] sm:$0xf] %vm2257_vm3, %v2867_v16  ;;  %v1651_v24 = vadd.f32 %v3417_v8, %v1516_v17  ;;  %v1578_v25 = vmul.f32 %v3412_v6, %v1348_v22  ;;  %v1517_v26 = vmul.f32 %v3007_v23, %v3412_v6  ;;  %v3071_v27 = vpop.f32.mrb[34].mxu1  ;;  %v1095_v28 = vpop.f32.mrb[35].mxu0 }
 0x12a   : > { %v1715_v29 = vadd.f32 %v3417_v8, %v1580_v20  ;;  %v1649_v30 = vadd.f32 %v3417_v8, %v1514_v21  ;;  %v1581_v31 = vmul.f32 %v3071_v27, %v3412_v6  ;;  %v1515_v32 = vmul.f32 %v3412_v6, %v1095_v28  ;;  %v1351_v33 = vpop.f32.mrb[35].mxu1 }
 0x12b   : > { %v2808_v34 = vpack.c.bf16 %v1651_v24, %v1651_v24  ;;  %v1713_v35 = vadd.f32 %v3417_v8, %v1578_v25  ;;  %v1652_v36 = vadd.f32 %v3417_v8, %v1517_v26  ;;  %v1579_v37 = vmul.f32 %v3412_v6, %v1351_v33 }
 0x12c   : > { %v2872_v38 = vpack.c.bf16 %v1715_v29, %v1715_v29  ;;  %v2806_v39 = vpack.c.bf16 %v1649_v30, %v1649_v30  ;;  %v1716_v40 = vadd.f32 %v3417_v8, %v1581_v31  ;;  %v1650_v41 = vadd.f32 %v3417_v8, %v1515_v32 }
 0x12d   : > { %2292 = vst.msk [vmem:[%s3430_s8 + $0x88] sm:$0xf] %vm2257_vm3, %v2808_v34  ;;  %v2870_v42 = vpack.c.bf16 %v1713_v35, %v1713_v35  ;;  %v2809_v43 = vpack.c.bf16 %v1652_v36, %v1652_v36  ;;  %v1714_v44 = vadd.f32 %v3417_v8, %v1579_v37 }
 0x12e   : > { %2356 = vst.msk [vmem:[%s3430_s8 + $0x188] sm:$0xf] %vm2257_vm3, %v2872_v38  ;;  %2290 = vst.msk [vmem:[%s3430_s8 + $0x80] sm:$0xf] %vm2257_vm3, %v2806_v39  ;;  %v2873_v45 = vpack.c.bf16 %v1716_v40, %v1716_v40  ;;  %v2807_v46 = vpack.c.bf16 %v1650_v41, %v1650_v41  ;;  %v3010_v47 = vpop.f32.mrb[36].mxu0 }
 0x12f   : > { %2354 = vst.msk [vmem:[%s3430_s8 + $0x180] sm:$0xf] %vm2257_vm3, %v2870_v42  ;;  %2293 = vst.msk [vmem:[%s3430_s8 + $0x8c] sm:$0xf] %vm2257_vm3, %v2809_v43  ;;  %v2871_v48 = vpack.c.bf16 %v1714_v44, %v1714_v44  ;;  %v1520_v49 = vmul.f32 %v3010_v47, %v3412_v6  ;;  %v3074_v50 = vpop.f32.mrb[36].mxu1  ;;  %v1108_v51 = vpop.f32.mrb[37].mxu0 }
 0x130   : > { %2357 = vst.msk [vmem:[%s3430_s8 + $0x18c] sm:$0xf] %vm2257_vm3, %v2873_v45  ;;  %2291 = vst.msk [vmem:[%s3430_s8 + $0x84] sm:$0xf] %vm2257_vm3, %v2807_v46  ;;  %v1584_v52 = vmul.f32 %v3074_v50, %v3412_v6  ;;  %v1518_v53 = vmul.f32 %v3412_v6, %v1108_v51  ;;  %v1364_v54 = vpop.f32.mrb[37].mxu1  ;;  %v3011_v55 = vpop.f32.mrb[38].mxu0 }
 0x131   : > { %2355 = vst.msk [vmem:[%s3430_s8 + $0x184] sm:$0xf] %vm2257_vm3, %v2871_v48  ;;  %v1655_v56 = vadd.f32 %v3417_v8, %v1520_v49  ;;  %v1582_v57 = vmul.f32 %v3412_v6, %v1364_v54  ;;  %v1521_v58 = vmul.f32 %v3011_v55, %v3412_v6  ;;  %v3075_v59 = vpop.f32.mrb[38].mxu1  ;;  %v1111_v60 = vpop.f32.mrb[39].mxu0 }
 0x132   : > { %v1719_v61 = vadd.f32 %v3417_v8, %v1584_v52  ;;  %v1653_v62 = vadd.f32 %v3417_v8, %v1518_v53  ;;  %v1585_v63 = vmul.f32 %v3075_v59, %v3412_v6  ;;  %v1519_v0 = vmul.f32 %v3412_v6, %v1111_v60  ;;  %v1367_v1 = vpop.f32.mrb[39].mxu1 }
 0x133   : > { %v2812_v2 = vpack.c.bf16 %v1655_v56, %v1655_v56  ;;  %v1717_v3 = vadd.f32 %v3417_v8, %v1582_v57  ;;  %v1656_v4 = vadd.f32 %v3417_v8, %v1521_v58  ;;  %v1583_v5 = vmul.f32 %v3412_v6, %v1367_v1 }
 0x134   : > { %v2876_v7 = vpack.c.bf16 %v1719_v61, %v1719_v61  ;;  %v2810_v9 = vpack.c.bf16 %v1653_v62, %v1653_v62  ;;  %v1720_v10 = vadd.f32 %v3417_v8, %v1585_v63  ;;  %v1654_v11 = vadd.f32 %v3417_v8, %v1519_v0 }
 0x135   : > { %2296 = vst.msk [vmem:[%s3430_s8 + $0x98] sm:$0xf] %vm2257_vm3, %v2812_v2  ;;  %v2874_v12 = vpack.c.bf16 %v1717_v3, %v1717_v3  ;;  %v2813_v13 = vpack.c.bf16 %v1656_v4, %v1656_v4  ;;  %v1718_v14 = vadd.f32 %v3417_v8, %v1583_v5 }
 0x136   : > { %2360 = vst.msk [vmem:[%s3430_s8 + $0x198] sm:$0xf] %vm2257_vm3, %v2876_v7  ;;  %2294 = vst.msk [vmem:[%s3430_s8 + $0x90] sm:$0xf] %vm2257_vm3, %v2810_v9  ;;  %v2877_v15 = vpack.c.bf16 %v1720_v10, %v1720_v10  ;;  %v2811_v16 = vpack.c.bf16 %v1654_v11, %v1654_v11  ;;  %v3014_v17 = vpop.f32.mrb[40].mxu0 }
 0x137   : > { %2358 = vst.msk [vmem:[%s3430_s8 + $0x190] sm:$0xf] %vm2257_vm3, %v2874_v12  ;;  %2297 = vst.msk [vmem:[%s3430_s8 + $0x9c] sm:$0xf] %vm2257_vm3, %v2813_v13  ;;  %v2875_v18 = vpack.c.bf16 %v1718_v14, %v1718_v14  ;;  %v1524_v19 = vmul.f32 %v3014_v17, %v3412_v6  ;;  %v3078_v20 = vpop.f32.mrb[40].mxu1  ;;  %v1124_v21 = vpop.f32.mrb[41].mxu0 }
 0x138   : > { %2361 = vst.msk [vmem:[%s3430_s8 + $0x19c] sm:$0xf] %vm2257_vm3, %v2877_v15  ;;  %2295 = vst.msk [vmem:[%s3430_s8 + $0x94] sm:$0xf] %vm2257_vm3, %v2811_v16  ;;  %v1588_v22 = vmul.f32 %v3078_v20, %v3412_v6  ;;  %v1522_v23 = vmul.f32 %v3412_v6, %v1124_v21  ;;  %v1380_v24 = vpop.f32.mrb[41].mxu1  ;;  %v3015_v25 = vpop.f32.mrb[42].mxu0 }
 0x139   : > { %2359 = vst.msk [vmem:[%s3430_s8 + $0x194] sm:$0xf] %vm2257_vm3, %v2875_v18  ;;  %v1659_v26 = vadd.f32 %v3417_v8, %v1524_v19  ;;  %v1586_v27 = vmul.f32 %v3412_v6, %v1380_v24  ;;  %v1525_v28 = vmul.f32 %v3015_v25, %v3412_v6  ;;  %v3079_v29 = vpop.f32.mrb[42].mxu1  ;;  %v1127_v30 = vpop.f32.mrb[43].mxu0 }
 0x13a   : > { %v1723_v31 = vadd.f32 %v3417_v8, %v1588_v22  ;;  %v1657_v32 = vadd.f32 %v3417_v8, %v1522_v23  ;;  %v1589_v33 = vmul.f32 %v3079_v29, %v3412_v6  ;;  %v1523_v34 = vmul.f32 %v3412_v6, %v1127_v30  ;;  %v1383_v35 = vpop.f32.mrb[43].mxu1 }
 0x13b   : > { %v2816_v36 = vpack.c.bf16 %v1659_v26, %v1659_v26  ;;  %v1721_v37 = vadd.f32 %v3417_v8, %v1586_v27  ;;  %v1660_v38 = vadd.f32 %v3417_v8, %v1525_v28  ;;  %v1587_v39 = vmul.f32 %v3412_v6, %v1383_v35 }
 0x13c   : > { %v2880_v40 = vpack.c.bf16 %v1723_v31, %v1723_v31  ;;  %v2814_v41 = vpack.c.bf16 %v1657_v32, %v1657_v32  ;;  %v1724_v42 = vadd.f32 %v3417_v8, %v1589_v33  ;;  %v1658_v43 = vadd.f32 %v3417_v8, %v1523_v34 }
 0x13d   : > { %2300 = vst.msk [vmem:[%s3430_s8 + $0xa8] sm:$0xf] %vm2257_vm3, %v2816_v36  ;;  %v2878_v44 = vpack.c.bf16 %v1721_v37, %v1721_v37  ;;  %v2817_v45 = vpack.c.bf16 %v1660_v38, %v1660_v38  ;;  %v1722_v46 = vadd.f32 %v3417_v8, %v1587_v39 }
 0x13e   : > { %2364 = vst.msk [vmem:[%s3430_s8 + $0x1a8] sm:$0xf] %vm2257_vm3, %v2880_v40  ;;  %2298 = vst.msk [vmem:[%s3430_s8 + $0xa0] sm:$0xf] %vm2257_vm3, %v2814_v41  ;;  %v2881_v47 = vpack.c.bf16 %v1724_v42, %v1724_v42  ;;  %v2815_v48 = vpack.c.bf16 %v1658_v43, %v1658_v43  ;;  %v3018_v49 = vpop.f32.mrb[44].mxu0 }
 0x13f   : > { %2362 = vst.msk [vmem:[%s3430_s8 + $0x1a0] sm:$0xf] %vm2257_vm3, %v2878_v44  ;;  %2301 = vst.msk [vmem:[%s3430_s8 + $0xac] sm:$0xf] %vm2257_vm3, %v2817_v45  ;;  %v2879_v50 = vpack.c.bf16 %v1722_v46, %v1722_v46  ;;  %v1528_v51 = vmul.f32 %v3018_v49, %v3412_v6  ;;  %v3082_v52 = vpop.f32.mrb[44].mxu1  ;;  %v1140_v53 = vpop.f32.mrb[45].mxu0 }
 0x140   : > { %2365 = vst.msk [vmem:[%s3430_s8 + $0x1ac] sm:$0xf] %vm2257_vm3, %v2881_v47  ;;  %2299 = vst.msk [vmem:[%s3430_s8 + $0xa4] sm:$0xf] %vm2257_vm3, %v2815_v48  ;;  %v1592_v54 = vmul.f32 %v3082_v52, %v3412_v6  ;;  %v1526_v55 = vmul.f32 %v3412_v6, %v1140_v53  ;;  %v1396_v56 = vpop.f32.mrb[45].mxu1  ;;  %v3019_v57 = vpop.f32.mrb[46].mxu0 }
 0x141   : > { %2363 = vst.msk [vmem:[%s3430_s8 + $0x1a4] sm:$0xf] %vm2257_vm3, %v2879_v50  ;;  %v1663_v58 = vadd.f32 %v3417_v8, %v1528_v51  ;;  %v1590_v59 = vmul.f32 %v3412_v6, %v1396_v56  ;;  %v1529_v60 = vmul.f32 %v3019_v57, %v3412_v6  ;;  %v3083_v61 = vpop.f32.mrb[46].mxu1  ;;  %v1143_v62 = vpop.f32.mrb[47].mxu0  ;;  %v3839_v52 = vld [vmem:[%s3959_s2] ss:$0 sm:$0xff] }
 0x142   : > { %v1727_v63 = vadd.f32 %v3417_v8, %v1592_v54  ;;  %v1661_v0 = vadd.f32 %v3417_v8, %v1526_v55  ;;  %v1593_v1 = vmul.f32 %v3083_v61, %v3412_v6  ;;  %v1527_v2 = vmul.f32 %v3412_v6, %v1143_v62  ;;  %v1399_v3 = vpop.f32.mrb[47].mxu1 }
 0x143   : > { %v2820_v4 = vpack.c.bf16 %v1663_v58, %v1663_v58  ;;  %v1725_v5 = vadd.f32 %v3417_v8, %v1590_v59  ;;  %v1664_v7 = vadd.f32 %v3417_v8, %v1529_v60  ;;  %v1591_v9 = vmul.f32 %v3412_v6, %v1399_v3  ;;  %v3853_v59 = vld [vmem:[%s3960_s3] ss:$0 sm:$0xff] }
 0x144   : > { %v2884_v10 = vpack.c.bf16 %v1727_v63, %v1727_v63  ;;  %v2818_v11 = vpack.c.bf16 %v1661_v0, %v1661_v0  ;;  %v1728_v12 = vadd.f32 %v3417_v8, %v1593_v1  ;;  %v1662_v13 = vadd.f32 %v3417_v8, %v1527_v2 }
 0x145   : > { %2304 = vst.msk [vmem:[%s3430_s8 + $0xb8] sm:$0xf] %vm2257_vm3, %v2820_v4  ;;  %v2882_v14 = vpack.c.bf16 %v1725_v5, %v1725_v5  ;;  %v2821_v15 = vpack.c.bf16 %v1664_v7, %v1664_v7  ;;  %v1726_v16 = vadd.f32 %v3417_v8, %v1591_v9 }
 0x146   : > { %2368 = vst.msk [vmem:[%s3430_s8 + $0x1b8] sm:$0xf] %vm2257_vm3, %v2884_v10  ;;  %2302 = vst.msk [vmem:[%s3430_s8 + $0xb0] sm:$0xf] %vm2257_vm3, %v2818_v11  ;;  %v2885_v17 = vpack.c.bf16 %v1728_v12, %v1728_v12  ;;  %v2819_v18 = vpack.c.bf16 %v1662_v13, %v1662_v13  ;;  %v3022_v19 = vpop.f32.mrb[48].mxu0 }
 0x147   : > { %2366 = vst.msk [vmem:[%s3430_s8 + $0x1b0] sm:$0xf] %vm2257_vm3, %v2882_v14  ;;  %2305 = vst.msk [vmem:[%s3430_s8 + $0xbc] sm:$0xf] %vm2257_vm3, %v2821_v15  ;;  %v2883_v20 = vpack.c.bf16 %v1726_v16, %v1726_v16  ;;  %v1532_v21 = vmul.f32 %v3022_v19, %v3412_v6  ;;  %v3086_v22 = vpop.f32.mrb[48].mxu1  ;;  %v1156_v23 = vpop.f32.mrb[49].mxu0 }
 0x148   : > { %2369 = vst.msk [vmem:[%s3430_s8 + $0x1bc] sm:$0xf] %vm2257_vm3, %v2885_v17  ;;  %2303 = vst.msk [vmem:[%s3430_s8 + $0xb4] sm:$0xf] %vm2257_vm3, %v2819_v18  ;;  %v1596_v24 = vmul.f32 %v3086_v22, %v3412_v6  ;;  %v1530_v25 = vmul.f32 %v3412_v6, %v1156_v23  ;;  %v1412_v26 = vpop.f32.mrb[49].mxu1  ;;  %v3023_v27 = vpop.f32.mrb[50].mxu0 }
 0x149   : > { %2367 = vst.msk [vmem:[%s3430_s8 + $0x1b4] sm:$0xf] %vm2257_vm3, %v2883_v20  ;;  %v1667_v28 = vadd.f32 %v3417_v8, %v1532_v21  ;;  %v1594_v29 = vmul.f32 %v3412_v6, %v1412_v26  ;;  %v1533_v30 = vmul.f32 %v3023_v27, %v3412_v6  ;;  %v3087_v31 = vpop.f32.mrb[50].mxu1  ;;  %v1159_v32 = vpop.f32.mrb[51].mxu0 }
 0x14a   : > { %v1731_v33 = vadd.f32 %v3417_v8, %v1596_v24  ;;  %v1665_v34 = vadd.f32 %v3417_v8, %v1530_v25  ;;  %v1597_v35 = vmul.f32 %v3087_v31, %v3412_v6  ;;  %v1531_v36 = vmul.f32 %v3412_v6, %v1159_v32  ;;  %v1415_v37 = vpop.f32.mrb[51].mxu1 }
 0x14b   : > { %v2824_v38 = vpack.c.bf16 %v1667_v28, %v1667_v28  ;;  %v1729_v39 = vadd.f32 %v3417_v8, %v1594_v29  ;;  %v1668_v40 = vadd.f32 %v3417_v8, %v1533_v30  ;;  %v1595_v41 = vmul.f32 %v3412_v6, %v1415_v37 }
 0x14c   : > { %v2888_v42 = vpack.c.bf16 %v1731_v33, %v1731_v33  ;;  %v2822_v43 = vpack.c.bf16 %v1665_v34, %v1665_v34  ;;  %v1732_v44 = vadd.f32 %v3417_v8, %v1597_v35  ;;  %v1666_v45 = vadd.f32 %v3417_v8, %v1531_v36 }
 0x14d   : > { %2308 = vst.msk [vmem:[%s3430_s8 + $0xc8] sm:$0xf] %vm2257_vm3, %v2824_v38  ;;  %v2886_v46 = vpack.c.bf16 %v1729_v39, %v1729_v39  ;;  %v2825_v47 = vpack.c.bf16 %v1668_v40, %v1668_v40  ;;  %v1730_v48 = vadd.f32 %v3417_v8, %v1595_v41 }
 0x14e   : > { %2372 = vst.msk [vmem:[%s3430_s8 + $0x1c8] sm:$0xf] %vm2257_vm3, %v2888_v42  ;;  %2306 = vst.msk [vmem:[%s3430_s8 + $0xc0] sm:$0xf] %vm2257_vm3, %v2822_v43  ;;  %v2889_v49 = vpack.c.bf16 %v1732_v44, %v1732_v44  ;;  %v2823_v6 = vpack.c.bf16 %v1666_v45, %v1666_v45  ;;  %v3026_v50 = vpop.f32.mrb[52].mxu0 }
 0x14f   : > { %2370 = vst.msk [vmem:[%s3430_s8 + $0x1c0] sm:$0xf] %vm2257_vm3, %v2886_v46  ;;  %2309 = vst.msk [vmem:[%s3430_s8 + $0xcc] sm:$0xf] %vm2257_vm3, %v2825_v47  ;;  %v2887_v51 = vpack.c.bf16 %v1730_v48, %v1730_v48  ;;  %v1536_v8 = vmul.f32 %v3839_v52, %v3026_v50  ;;  %v3090_v53 = vpop.f32.mrb[52].mxu1  ;;  %v1172_v54 = vpop.f32.mrb[53].mxu0 }
 0x150   : > { %2373 = vst.msk [vmem:[%s3430_s8 + $0x1cc] sm:$0xf] %vm2257_vm3, %v2889_v49  ;;  %2307 = vst.msk [vmem:[%s3430_s8 + $0xc4] sm:$0xf] %vm2257_vm3, %v2823_v6  ;;  %v1600_v55 = vmul.f32 %v3839_v52, %v3090_v53  ;;  %v1534_v56 = vmul.f32 %v3839_v52, %v1172_v54  ;;  %v1428_v57 = vpop.f32.mrb[53].mxu1  ;;  %v3027_v58 = vpop.f32.mrb[54].mxu0 }
 0x151   : > { %2371 = vst.msk [vmem:[%s3430_s8 + $0x1c4] sm:$0xf] %vm2257_vm3, %v2887_v51  ;;  %v1671_v60 = vadd.f32 %v3853_v59, %v1536_v8  ;;  %v1598_v61 = vmul.f32 %v3839_v52, %v1428_v57  ;;  %v1537_v62 = vmul.f32 %v3839_v52, %v3027_v58  ;;  %v3091_v63 = vpop.f32.mrb[54].mxu1  ;;  %v1175_v0 = vpop.f32.mrb[55].mxu0 }
 0x152   : > { %v1735_v1 = vadd.f32 %v3853_v59, %v1600_v55  ;;  %v1669_v2 = vadd.f32 %v3853_v59, %v1534_v56  ;;  %v1601_v3 = vmul.f32 %v3839_v52, %v3091_v63  ;;  %v1535_v4 = vmul.f32 %v3839_v52, %v1175_v0  ;;  %v1431_v5 = vpop.f32.mrb[55].mxu1 }
 0x153   : > { %v2828_v7 = vpack.c.bf16 %v1671_v60, %v1671_v60  ;;  %v1733_v9 = vadd.f32 %v3853_v59, %v1598_v61  ;;  %v1672_v10 = vadd.f32 %v3853_v59, %v1537_v62  ;;  %v1599_v11 = vmul.f32 %v3839_v52, %v1431_v5 }
 0x154   : > { %v2892_v12 = vpack.c.bf16 %v1735_v1, %v1735_v1  ;;  %v2826_v13 = vpack.c.bf16 %v1669_v2, %v1669_v2  ;;  %v1736_v14 = vadd.f32 %v3853_v59, %v1601_v3  ;;  %v1670_v15 = vadd.f32 %v3853_v59, %v1535_v4 }
 0x155   : > { %2312 = vst.msk [vmem:[%s3430_s8 + $0xd8] sm:$0xf] %vm2257_vm3, %v2828_v7  ;;  %v2890_v16 = vpack.c.bf16 %v1733_v9, %v1733_v9  ;;  %v2829_v17 = vpack.c.bf16 %v1672_v10, %v1672_v10  ;;  %v1734_v18 = vadd.f32 %v3853_v59, %v1599_v11 }
 0x156   : > { %2376 = vst.msk [vmem:[%s3430_s8 + $0x1d8] sm:$0xf] %vm2257_vm3, %v2892_v12  ;;  %2310 = vst.msk [vmem:[%s3430_s8 + $0xd0] sm:$0xf] %vm2257_vm3, %v2826_v13  ;;  %v2893_v19 = vpack.c.bf16 %v1736_v14, %v1736_v14  ;;  %v2827_v20 = vpack.c.bf16 %v1670_v15, %v1670_v15  ;;  %v3030_v21 = vpop.f32.mrb[56].mxu0 }
 0x157   : > { %2374 = vst.msk [vmem:[%s3430_s8 + $0x1d0] sm:$0xf] %vm2257_vm3, %v2890_v16  ;;  %2313 = vst.msk [vmem:[%s3430_s8 + $0xdc] sm:$0xf] %vm2257_vm3, %v2829_v17  ;;  %v2891_v22 = vpack.c.bf16 %v1734_v18, %v1734_v18  ;;  %v1540_v23 = vmul.f32 %v3839_v52, %v3030_v21  ;;  %v3094_v24 = vpop.f32.mrb[56].mxu1  ;;  %v1188_v25 = vpop.f32.mrb[57].mxu0 }
 0x158   : > { %2377 = vst.msk [vmem:[%s3430_s8 + $0x1dc] sm:$0xf] %vm2257_vm3, %v2893_v19  ;;  %2311 = vst.msk [vmem:[%s3430_s8 + $0xd4] sm:$0xf] %vm2257_vm3, %v2827_v20  ;;  %v1604_v26 = vmul.f32 %v3839_v52, %v3094_v24  ;;  %v1538_v27 = vmul.f32 %v3839_v52, %v1188_v25  ;;  %v1444_v28 = vpop.f32.mrb[57].mxu1  ;;  %v3031_v29 = vpop.f32.mrb[58].mxu0 }
 0x159   : > { %2375 = vst.msk [vmem:[%s3430_s8 + $0x1d4] sm:$0xf] %vm2257_vm3, %v2891_v22  ;;  %v1675_v30 = vadd.f32 %v3853_v59, %v1540_v23  ;;  %v1602_v31 = vmul.f32 %v3839_v52, %v1444_v28  ;;  %v1541_v32 = vmul.f32 %v3839_v52, %v3031_v29  ;;  %v3095_v33 = vpop.f32.mrb[58].mxu1  ;;  %v1191_v34 = vpop.f32.mrb[59].mxu0 }
 0x15a   : > { %v1739_v35 = vadd.f32 %v3853_v59, %v1604_v26  ;;  %v1673_v36 = vadd.f32 %v3853_v59, %v1538_v27  ;;  %v1605_v37 = vmul.f32 %v3839_v52, %v3095_v33  ;;  %v1539_v38 = vmul.f32 %v3839_v52, %v1191_v34  ;;  %v1447_v39 = vpop.f32.mrb[59].mxu1 }
 0x15b   : > { %v2832_v40 = vpack.c.bf16 %v1675_v30, %v1675_v30  ;;  %v1737_v41 = vadd.f32 %v3853_v59, %v1602_v31  ;;  %v1676_v42 = vadd.f32 %v3853_v59, %v1541_v32  ;;  %v1603_v43 = vmul.f32 %v3839_v52, %v1447_v39 }
 0x15c   : > { %v2896_v44 = vpack.c.bf16 %v1739_v35, %v1739_v35  ;;  %v2830_v45 = vpack.c.bf16 %v1673_v36, %v1673_v36  ;;  %v1740_v46 = vadd.f32 %v3853_v59, %v1605_v37  ;;  %v1674_v47 = vadd.f32 %v3853_v59, %v1539_v38 }
 0x15d   : > { %2316 = vst.msk [vmem:[%s3430_s8 + $0xe8] sm:$0xf] %vm2257_vm3, %v2832_v40  ;;  %v2894_v48 = vpack.c.bf16 %v1737_v41, %v1737_v41  ;;  %v2833_v49 = vpack.c.bf16 %v1676_v42, %v1676_v42  ;;  %v1738_v6 = vadd.f32 %v3853_v59, %v1603_v43 }
 0x15e   : > { %2380 = vst.msk [vmem:[%s3430_s8 + $0x1e8] sm:$0xf] %vm2257_vm3, %v2896_v44  ;;  %2314 = vst.msk [vmem:[%s3430_s8 + $0xe0] sm:$0xf] %vm2257_vm3, %v2830_v45  ;;  %v2897_v50 = vpack.c.bf16 %v1740_v46, %v1740_v46  ;;  %v2831_v51 = vpack.c.bf16 %v1674_v47, %v1674_v47  ;;  %v3034_v8 = vpop.f32.mrb[60].mxu0 }
 0x15f   : > { %2378 = vst.msk [vmem:[%s3430_s8 + $0x1e0] sm:$0xf] %vm2257_vm3, %v2894_v48  ;;  %2317 = vst.msk [vmem:[%s3430_s8 + $0xec] sm:$0xf] %vm2257_vm3, %v2833_v49  ;;  %v2895_v53 = vpack.c.bf16 %v1738_v6, %v1738_v6  ;;  %v1544_v54 = vmul.f32 %v3839_v52, %v3034_v8  ;;  %v3098_v55 = vpop.f32.mrb[60].mxu1  ;;  %v1204_v56 = vpop.f32.mrb[61].mxu0 }
 0x160   : > { %2381 = vst.msk [vmem:[%s3430_s8 + $0x1ec] sm:$0xf] %vm2257_vm3, %v2897_v50  ;;  %2315 = vst.msk [vmem:[%s3430_s8 + $0xe4] sm:$0xf] %vm2257_vm3, %v2831_v51  ;;  %v1608_v57 = vmul.f32 %v3839_v52, %v3098_v55  ;;  %v1542_v58 = vmul.f32 %v3839_v52, %v1204_v56  ;;  %v1460_v60 = vpop.f32.mrb[61].mxu1  ;;  %v3035_v61 = vpop.f32.mrb[62].mxu0 }
 0x161   : > { %2379 = vst.msk [vmem:[%s3430_s8 + $0x1e4] sm:$0xf] %vm2257_vm3, %v2895_v53  ;;  %v1679_v62 = vadd.f32 %v3853_v59, %v1544_v54  ;;  %v1606_v63 = vmul.f32 %v3839_v52, %v1460_v60  ;;  %v1545_v0 = vmul.f32 %v3839_v52, %v3035_v61  ;;  %v3099_v1 = vpop.f32.mrb[62].mxu1  ;;  %v1207_v2 = vpop.f32.mrb[63].mxu0 }
 0x162   : > { %v1743_v3 = vadd.f32 %v3853_v59, %v1608_v57  ;;  %v1677_v4 = vadd.f32 %v3853_v59, %v1542_v58  ;;  %v1609_v5 = vmul.f32 %v3839_v52, %v3099_v1  ;;  %v1543_v7 = vmul.f32 %v3839_v52, %v1207_v2  ;;  %v1463_v9 = vpop.f32.mrb[63].mxu1 }
 0x163   : > { %v2836_v10 = vpack.c.bf16 %v1679_v62, %v1679_v62  ;;  %v1741_v11 = vadd.f32 %v3853_v59, %v1606_v63  ;;  %v1680_v12 = vadd.f32 %v3853_v59, %v1545_v0  ;;  %v1607_v13 = vmul.f32 %v3839_v52, %v1463_v9 }
 0x164   : > { %v2900_v14 = vpack.c.bf16 %v1743_v3, %v1743_v3  ;;  %v2834_v15 = vpack.c.bf16 %v1677_v4, %v1677_v4  ;;  %v1744_v16 = vadd.f32 %v3853_v59, %v1609_v5  ;;  %v1678_v17 = vadd.f32 %v3853_v59, %v1543_v7 }
 0x165   : > { %2320 = vst.msk [vmem:[%s3430_s8 + $0xf8] sm:$0xf] %vm2257_vm3, %v2836_v10  ;;  %v2898_v18 = vpack.c.bf16 %v1741_v11, %v1741_v11  ;;  %v2837_v19 = vpack.c.bf16 %v1680_v12, %v1680_v12  ;;  %v1742_v20 = vadd.f32 %v3853_v59, %v1607_v13 }
 0x166   : > { %2384 = vst.msk [vmem:[%s3430_s8 + $0x1f8] sm:$0xf] %vm2257_vm3, %v2900_v14  ;;  %2318 = vst.msk [vmem:[%s3430_s8 + $0xf0] sm:$0xf] %vm2257_vm3, %v2834_v15  ;;  %v2901_v52 = vpack.c.bf16 %v1744_v16, %v1744_v16  ;;  %v2835_v21 = vpack.c.bf16 %v1678_v17, %v1678_v17 }
 0x167   : > { %2382 = vst.msk [vmem:[%s3430_s8 + $0x1f0] sm:$0xf] %vm2257_vm3, %v2898_v18  ;;  %2321 = vst.msk [vmem:[%s3430_s8 + $0xfc] sm:$0xf] %vm2257_vm3, %v2837_v19  ;;  %v2899_v22 = vpack.c.bf16 %v1742_v20, %v1742_v20 }
 0x168   : > { %2385 = vst.msk [vmem:[%s3430_s8 + $0x1fc] sm:$0xf] %vm2257_vm3, %v2901_v52  ;;  %2319 = vst.msk [vmem:[%s3430_s8 + $0xf4] sm:$0xf] %vm2257_vm3, %v2835_v21 }
 0x169   : > { %2383 = vst.msk [vmem:[%s3430_s8 + $0x1f4] sm:$0xf] %vm2257_vm3, %v2899_v22 }
 0x16a PF: > { %s14_s17 = sadd.s32 1, %s3219_s17   ;;  %s3962_s15 = smov %s3215_s16 }
 0x16b   : > { %p11_p5 = scmp.ge.s32.totalorder %s14_s17, 10   ;;  %s3963_s16 = smov %s3965_s18 }
 0x16d   :  { %13 = sbr.rel (!%p11_p5) target bundleno = 2 (0x2), region = 75 }

</bundles_post_ra>
